<compile_context>
chip_gen: v6e
topology: v6e:2x2x1
jax: 0.10.0
libtpu: 0.0.40
codegen_flags: <defaults>
</compile_context>

<pallas_src>
import functools

import jax
import jax.numpy as jnp
from jax.experimental import pallas as pl
from jax.experimental.pallas import tpu as pltpu


# ------------------------------- geometry ---------------------------------- #

def _conv_spatial(input_shape):
    _, h, w = input_shape
    o = lambda s, k, st: (s - k) // st + 1
    h = o(o(o(h, 8, 4), 4, 2), 3, 1)
    w = o(o(o(w, 8, 4), 4, 2), 3, 1)
    return h, w


def _geometry(input_shape):
    cin, H, W = input_shape
    assert H % 4 == 0 and W % 4 == 0, "H, W must be multiples of 4"
    Hs, Ws = H // 4, W // 4                    # space-to-depth(4) grid
    Ho1, Wo1 = Hs - 1, Ws - 1                  # conv1 output (== (H-8)//4+1)
    assert Ho1 % 2 == 0 and Wo1 % 2 == 0, "need H % 8 == 4 and W % 8 == 4"
    Ho2, Wo2 = (Ho1 - 4) // 2 + 1, (Wo1 - 4) // 2 + 1
    Ho3, Wo3 = Ho2 - 2, Wo2 - 2
    assert Ho3 >= 1 and Wo3 >= 1, "input too small for the conv stack"
    Hg, Wg = (Hs + 1) // 2, (Ws + 1) // 2      # parity-class flat-grid shape
    Mg = Hg * Wg
    L1 = Mg - (Wg + 1)                         # rows computed per layer
    L2 = L1 - (Wg + 1)
    L3 = L2 - (2 * Wg + 2)
    # Flat-grid row h*Wg + w of every valid output position must lie inside
    # the computed prefix of each layer.
    assert (Ho1 // 2 - 1) * Wg + (Wo1 // 2 - 1) < L1
    assert (Ho2 - 1) * Wg + (Wo2 - 1) < L2
    assert (Ho3 - 1) * Wg + (Wo3 - 1) < L3
    return dict(cin=cin, Hs=Hs, Ws=Ws, Hg=Hg, Wg=Wg, Mg=Mg, Cs=16 * cin,
                Ho3=Ho3, Wo3=Wo3, L1=L1, L2=L2, L3=L3)


# ------------------------------ fused kernel ------------------------------- #

def _fused_forward_kernel(x00_ref, x01_ref, x10_ref, x11_ref,
                          w1_ref, b1_ref, w2_ref, b2_ref, w3_ref, b3_ref,
                          wf1_ref, bf1_ref, wf2_ref, bf2_ref,
                          out_ref, *, wg, l1, l2, l3, ho3, wo3):
    # Space-to-depth(4) + 2x2 parity-split input classes, flattened to
    # (Hg*Wg, 16*Cin) bf16 matrices; [p][q] = (row parity, col parity).
    xcls = ((x00_ref[0], x01_ref[0]), (x10_ref[0], x11_ref[0]))

    # ---- conv1: 8x8 stride-4 == 2x2 stride-1 conv on the s2d(4) input.
    # The output is produced directly in 2x2 output-parity classes (exactly
    # the space-to-depth(2) layout conv2 needs), all on the same flat grid.
    o1 = [[None, None], [None, None]]
    for a in (0, 1):
        for b in (0, 1):
            acc = b1_ref[...]                                   # (1, 32) f32
            for ti in (0, 1):
                for tj in (0, 1):
                    p, r0 = (a + ti) % 2, (a + ti) // 2
                    q, c0 = (b + tj) % 2, (b + tj) // 2
                    off = r0 * wg + c0
                    acc = acc + jnp.dot(xcls[p][q][off:off + l1, :],
                                        w1_ref[2 * ti + tj],
                                        preferred_element_type=jnp.float32)
            o1[a][b] = jnp.maximum(acc, 0.0).astype(jnp.bfloat16)   # (l1, 32)

    # ---- conv2: 4x4 stride-2 == 16 stride-1 taps on the parity classes.
    acc = b2_ref[...]
    for i in range(4):
        for j in range(4):
            off = (i // 2) * wg + (j // 2)
            acc = acc + jnp.dot(o1[i % 2][j % 2][off:off + l2, :],
                                w2_ref[4 * i + j],
                                preferred_element_type=jnp.float32)
    o2 = jnp.maximum(acc, 0.0).astype(jnp.bfloat16)                 # (l2, 64)

    # ---- conv3: 3x3 stride-1.
    acc = b3_ref[...]
    for i in range(3):
        for j in range(3):
            off = i * wg + j
            acc = acc + jnp.dot(o2[off:off + l3, :], w3_ref[3 * i + j],
                                preferred_element_type=jnp.float32)
    o3 = jnp.maximum(acc, 0.0).astype(jnp.bfloat16)                 # (l3, 64)

    # ---- fc1 (+ReLU): contraction over the valid conv3 positions; per-
    # position weight slabs are pre-permuted to match torch's NCHW flatten.
    h = bf1_ref[...]                                                # (1, 512)
    for hh in range(ho3):
        for ww in range(wo3):
            row = hh * wg + ww
            h = h + jnp.dot(o3[row:row + 1, :], wf1_ref[hh * wo3 + ww],
                            preferred_element_type=jnp.float32)
    # bf16 requantization of the hidden activation (documented precision
    # trade-off; within test tolerance).
    h = jnp.maximum(h, 0.0).astype(jnp.bfloat16)

    # ---- fc2 + exact softmax (lane-padded to 128; pad bias -1e30 -> prob 0).
    logits = jnp.dot(h, wf2_ref[...], preferred_element_type=jnp.float32)
    logits = logits + bf2_ref[...]
    logits = logits - jnp.max(logits, axis=-1, keepdims=True)
    e = jnp.exp(logits)
    probs = e / jnp.sum(e, axis=-1, keepdims=True)                  # exact
    out_ref[0] = probs.astype(out_ref.dtype)


# ----------------------------- forward wrapper ------------------------------ #

def atari_policy_forward(params, state, n_actions):
    """Returns the Categorical probabilities softmax(fc(conv(state)))."""
    # TODO(synk): torch.distributions.Categorical has no Pallas equivalent; we
    # return its probability parameters instead.
    B = state.shape[0]
    g = _geometry((state.shape[1], state.shape[2], state.shape[3]))
    Cs, Mg, Hg, Wg = g["Cs"], g["Mg"], g["Hg"], g["Wg"]

    # One-time input permutation (plain XLA, no data blow-up): NCHW -> NHWC,
    # space-to-depth(4), then split into 2x2 spatial-parity classes padded to
    # a common (Hg, Wg) grid and flattened to (Hg*Wg, 16*Cin).
    xh = jnp.transpose(state.astype(jnp.float32), (0, 2, 3, 1))
    xs = xh.reshape(B, g["Hs"], 4, g["Ws"], 4, g["cin"])
    xs = jnp.transpose(xs, (0, 1, 3, 2, 4, 5)).reshape(B, g["Hs"], g["Ws"], Cs)
    classes = []
    for p in (0, 1):
        for q in (0, 1):
            c = xs[:, p::2, q::2, :]
            c = jnp.pad(c, ((0, 0), (0, Hg - c.shape[1]),
                            (0, Wg - c.shape[2]), (0, 0)))
            classes.append(c.reshape(B, Mg, Cs).astype(jnp.bfloat16))

    kernel = functools.partial(
        _fused_forward_kernel, wg=Wg, l1=g["L1"], l2=g["L2"], l3=g["L3"],
        ho3=g["Ho3"], wo3=g["Wo3"])

    cls_spec = pl.BlockSpec((1, Mg, Cs), lambda b: (b, 0, 0))
    res3 = lambda s: pl.BlockSpec(s, lambda b: (0, 0, 0))   # resident weights
    res2 = lambda s: pl.BlockSpec(s, lambda b: (0, 0))      # resident 2-D

    out = pl.pallas_call(
        kernel,
        out_shape=jax.ShapeDtypeStruct((B, 1, 128), jnp.float32),
        grid=(B,),
        in_specs=[cls_spec, cls_spec, cls_spec, cls_spec,
                  res3(params["w1"].shape), res2(params["b1"].shape),
                  res3(params["w2"].shape), res2(params["b2"].shape),
                  res3(params["w3"].shape), res2(params["b3"].shape),
                  res3(params["wf1"].shape), res2(params["bf1"].shape),
                  res2(params["wf2"].shape), res2(params["bf2"].shape)],
        out_specs=pl.BlockSpec((1, 1, 128), lambda b: (b, 0, 0)),
        compiler_params=pltpu.CompilerParams(
            dimension_semantics=("parallel",)),
    )(*classes,
      params["w1"], params["b1"], params["w2"], params["b2"],
      params["w3"], params["b3"], params["wf1"], params["bf1"],
      params["wf2"], params["bf2"])
    return out[:, 0, :n_actions]


# ------------------------------- parameters -------------------------------- #

def init_params(key, input_shape, n_actions):
    """Torch-layout parameters: conv (Cout,Cin,KH,KW), fc (out,in)."""
    cin = input_shape[0]
    h3, w3 = _conv_spatial(input_shape)
    conv_out = 64 * h3 * w3
    ks = jax.random.split(key, 10)
    rnd = lambda k, shape: (0.05 * jax.random.normal(k, shape)).astype(jnp.float32)
    return {
        "c1_w": rnd(ks[0], (32, cin, 8, 8)), "c1_b": rnd(ks[1], (32,)),
        "c2_w": rnd(ks[2], (64, 32, 4, 4)),  "c2_b": rnd(ks[3], (64,)),
        "c3_w": rnd(ks[4], (64, 64, 3, 3)),  "c3_b": rnd(ks[5], (64,)),
        "fc1_w": rnd(ks[6], (512, conv_out)), "fc1_b": rnd(ks[7], (512,)),
        "fc2_w": rnd(ks[8], (n_actions, 512)), "fc2_b": rnd(ks[9], (n_actions,)),
    }


def prepare_params(tp, input_shape, n_actions):
    """One-time conversion of torch-layout params to the kernel's per-tap
    (K, Cout) slab layout (bf16 weights, f32 biases)."""
    cin = input_shape[0]
    Ho3, Wo3 = _conv_spatial(input_shape)
    assert n_actions <= 128

    # conv1: (32, cin, 8, 8) -> 4 taps of (16*cin, 32), K packed as (di,dj,ci).
    w1 = jnp.transpose(tp["c1_w"], (2, 3, 1, 0))            # (8,8,cin,32)
    w1 = w1.reshape(2, 4, 2, 4, cin, 32)                     # (ti,di,tj,dj,ci,co)
    w1 = jnp.transpose(w1, (0, 2, 1, 3, 4, 5))               # (ti,tj,di,dj,ci,co)
    w1 = w1.reshape(4, 16 * cin, 32).astype(jnp.bfloat16)

    w2 = jnp.transpose(tp["c2_w"], (2, 3, 1, 0)).reshape(16, 32, 64)
    w3 = jnp.transpose(tp["c3_w"], (2, 3, 1, 0)).reshape(9, 64, 64)

    # fc1: (512, 64*Ho3*Wo3) torch NCHW-flat -> per-position (64, 512) slabs.
    fc1 = tp["fc1_w"].reshape(512, 64, Ho3, Wo3)
    fc1 = jnp.transpose(fc1, (2, 3, 1, 0)).reshape(Ho3 * Wo3, 64, 512)

    # fc2: (n_actions, 512) -> (512, 128) lane-padded; pad bias = -1e30.
    npad = 128
    fc2 = jnp.transpose(tp["fc2_w"], (1, 0))
    fc2 = jnp.pad(fc2, ((0, 0), (0, npad - n_actions)))
    fc2_b = jnp.pad(tp["fc2_b"].astype(jnp.float32), (0, npad - n_actions),
                    constant_values=-1e30)

    return {
        "w1": w1, "b1": tp["c1_b"].reshape(1, 32).astype(jnp.float32),
        "w2": w2.astype(jnp.bfloat16),
        "b2": tp["c2_b"].reshape(1, 64).astype(jnp.float32),
        "w3": w3.astype(jnp.bfloat16),
        "b3": tp["c3_b"].reshape(1, 64).astype(jnp.float32),
        "wf1": fc1.astype(jnp.bfloat16),
        "bf1": tp["fc1_b"].reshape(1, 512).astype(jnp.float32),
        "wf2": fc2.astype(jnp.bfloat16),
        "bf2": fc2_b.reshape(1, npad),
    }


# -------------------------- pure-JAX f32 reference ------------------------- #

def reference_forward(tp, state):
    x = state.astype(jnp.float32)

    def conv(x, w, b, stride):
        y = jax.lax.conv_general_dilated(
            x, w.astype(jnp.float32), (stride, stride), "VALID",
            dimension_numbers=("NCHW", "OIHW", "NCHW"))
        return jnp.maximum(y + b.reshape(1, -1, 1, 1), 0.0)

    x = conv(x, tp["c1_w"], tp["c1_b"], 4)
    x = conv(x, tp["c2_w"], tp["c2_b"], 2)
    x = conv(x, tp["c3_w"], tp["c3_b"], 1)
    flat = x.reshape(x.shape[0], -1)
    h = jnp.maximum(flat @ tp["fc1_w"].T + tp["fc1_b"], 0.0)
    logits = h @ tp["fc2_w"].T + tp["fc2_b"]
    return jax.nn.softmax(logits, axis=-1)


if __name__ == "__main__":
    key = jax.random.PRNGKey(0)
    input_shape = (4, 36, 36)   # smallest spatial size valid for 8/4 -> 4/2 -> 3/1
    n_actions = 6
    batch = 2

    k_param, k_x = jax.random.split(key)
    torch_params = init_params(k_param, input_shape, n_actions)
    params = prepare_params(torch_params, input_shape, n_actions)
    x = jax.random.uniform(k_x, (batch,) + input_shape, dtype=jnp.float32)

    fwd = jax.jit(atari_policy_forward, static_argnames=("n_actions",))
    probs = jax.block_until_ready(fwd(params, x, n_actions=n_actions))

    assert probs.shape == (batch, n_actions)
    assert bool(jnp.all(jnp.isfinite(probs)))
    assert bool(jnp.allclose(jnp.sum(probs, axis=-1), 1.0, atol=1e-3))

    ref = reference_forward(torch_params, x)
    max_diff = float(jnp.max(jnp.abs(probs - ref)))
    # bf16 GEMM inputs + bf16 inter-layer activations: loose tolerance.
    assert max_diff < 3e-2, max_diff
    print("KERNEL_OK")
</pallas_src>

<mosaic_0001>
module attributes {stable_mosaic.version = 11 : i64} {
  func.func @_fused_forward_kernel(%arg0: i32, %arg1: memref<1x25x64xbf16, #tpu.memory_space<vmem>>, %arg2: memref<1x25x64xbf16, #tpu.memory_space<vmem>>, %arg3: memref<1x25x64xbf16, #tpu.memory_space<vmem>>, %arg4: memref<1x25x64xbf16, #tpu.memory_space<vmem>>, %arg5: memref<4x64x32xbf16, #tpu.memory_space<vmem>>, %arg6: memref<1x32xf32, #tpu.memory_space<vmem>>, %arg7: memref<16x32x64xbf16, #tpu.memory_space<vmem>>, %arg8: memref<1x64xf32, #tpu.memory_space<vmem>>, %arg9: memref<9x64x64xbf16, #tpu.memory_space<vmem>>, %arg10: memref<1x64xf32, #tpu.memory_space<vmem>>, %arg11: memref<1x64x512xbf16, #tpu.memory_space<vmem>>, %arg12: memref<1x512xf32, #tpu.memory_space<vmem>>, %arg13: memref<512x128xbf16, #tpu.memory_space<vmem>>, %arg14: memref<1x128xf32, #tpu.memory_space<vmem>>, %arg15: memref<1x1x128xf32, #tpu.memory_space<vmem>>) attributes {dimension_semantics = [#tpu.dimension_semantics<parallel>], iteration_bounds = array<i64: 2>, scalar_prefetch = 0 : i64, scratch_operands = 0 : i64, tpu.core_type = #tpu.core_type<tc>, window_params = [{transform_indices = @transform_0, window_bounds = array<i64: 1, 25, 64>}, {transform_indices = @transform_1, window_bounds = array<i64: 1, 25, 64>}, {transform_indices = @transform_2, window_bounds = array<i64: 1, 25, 64>}, {transform_indices = @transform_3, window_bounds = array<i64: 1, 25, 64>}, {pipeline_mode = #tpu.pipeline_mode<synchronous>, transform_indices = @transform_4, window_bounds = array<i64: 4, 64, 32>}, {pipeline_mode = #tpu.pipeline_mode<synchronous>, transform_indices = @transform_5, window_bounds = array<i64: 1, 32>}, {pipeline_mode = #tpu.pipeline_mode<synchronous>, transform_indices = @transform_6, window_bounds = array<i64: 16, 32, 64>}, {pipeline_mode = #tpu.pipeline_mode<synchronous>, transform_indices = @transform_7, window_bounds = array<i64: 1, 64>}, {pipeline_mode = #tpu.pipeline_mode<synchronous>, transform_indices = @transform_8, window_bounds = array<i64: 9, 64, 64>}, {pipeline_mode = #tpu.pipeline_mode<synchronous>, transform_indices = @transform_9, window_bounds = array<i64: 1, 64>}, {pipeline_mode = #tpu.pipeline_mode<synchronous>, transform_indices = @transform_10, window_bounds = array<i64: 1, 64, 512>}, {pipeline_mode = #tpu.pipeline_mode<synchronous>, transform_indices = @transform_11, window_bounds = array<i64: 1, 512>}, {pipeline_mode = #tpu.pipeline_mode<synchronous>, transform_indices = @transform_12, window_bounds = array<i64: 512, 128>}, {pipeline_mode = #tpu.pipeline_mode<synchronous>, transform_indices = @transform_13, window_bounds = array<i64: 1, 128>}, {transform_indices = @transform_14, window_bounds = array<i64: 1, 1, 128>}]} {
    %c0 = arith.constant 0 : index
    %c0_0 = arith.constant 0 : index
    %c0_1 = arith.constant 0 : index
    %0 = vector.load %arg1[%c0, %c0_0, %c0_1] : memref<1x25x64xbf16, #tpu.memory_space<vmem>>, vector<1x25x64xbf16>
    %1 = vector.shape_cast %0 : vector<1x25x64xbf16> to vector<25x64xbf16>
    %c0_2 = arith.constant 0 : index
    %c0_3 = arith.constant 0 : index
    %c0_4 = arith.constant 0 : index
    %2 = vector.load %arg2[%c0_2, %c0_3, %c0_4] : memref<1x25x64xbf16, #tpu.memory_space<vmem>>, vector<1x25x64xbf16>
    %3 = vector.shape_cast %2 : vector<1x25x64xbf16> to vector<25x64xbf16>
    %c0_5 = arith.constant 0 : index
    %c0_6 = arith.constant 0 : index
    %c0_7 = arith.constant 0 : index
    %4 = vector.load %arg3[%c0_5, %c0_6, %c0_7] : memref<1x25x64xbf16, #tpu.memory_space<vmem>>, vector<1x25x64xbf16>
    %5 = vector.shape_cast %4 : vector<1x25x64xbf16> to vector<25x64xbf16>
    %c0_8 = arith.constant 0 : index
    %c0_9 = arith.constant 0 : index
    %c0_10 = arith.constant 0 : index
    %6 = vector.load %arg4[%c0_8, %c0_9, %c0_10] : memref<1x25x64xbf16, #tpu.memory_space<vmem>>, vector<1x25x64xbf16>
    %7 = vector.shape_cast %6 : vector<1x25x64xbf16> to vector<25x64xbf16>
    %c0_11 = arith.constant 0 : index
    %c0_12 = arith.constant 0 : index
    %8 = vector.load %arg6[%c0_11, %c0_12] : memref<1x32xf32, #tpu.memory_space<vmem>>, vector<1x32xf32>
    %9 = vector.extract_strided_slice %1 {offsets = [0, 0], sizes = [19, 64], strides = [1, 1]} : vector<25x64xbf16> to vector<19x64xbf16>
    %c0_13 = arith.constant 0 : index
    %c0_14 = arith.constant 0 : index
    %c0_15 = arith.constant 0 : index
    %10 = vector.load %arg5[%c0_13, %c0_14, %c0_15] : memref<4x64x32xbf16, #tpu.memory_space<vmem>>, vector<1x64x32xbf16>
    %11 = vector.shape_cast %10 : vector<1x64x32xbf16> to vector<64x32xbf16>
    %cst = arith.constant dense<0.000000e+00> : vector<19x32xf32>
    %12 = tpu.matmul %9, %11, %cst {dimension_numbers = #tpu.dot_dimension_numbers<[1], [0], [0], [1], [0, 0, 1, 1], [], []>} : vector<19x64xbf16>, vector<64x32xbf16>, vector<19x32xf32> -> vector<19x32xf32>
    %13 = vector.broadcast %8 : vector<1x32xf32> to vector<19x32xf32>
    %14 = arith.addf %13, %12 : vector<19x32xf32>
    %15 = vector.extract_strided_slice %3 {offsets = [0, 0], sizes = [19, 64], strides = [1, 1]} : vector<25x64xbf16> to vector<19x64xbf16>
    %c1 = arith.constant 1 : index
    %c0_16 = arith.constant 0 : index
    %c0_17 = arith.constant 0 : index
    %16 = vector.load %arg5[%c1, %c0_16, %c0_17] : memref<4x64x32xbf16, #tpu.memory_space<vmem>>, vector<1x64x32xbf16>
    %17 = vector.shape_cast %16 : vector<1x64x32xbf16> to vector<64x32xbf16>
    %cst_18 = arith.constant dense<0.000000e+00> : vector<19x32xf32>
    %18 = tpu.matmul %15, %17, %cst_18 {dimension_numbers = #tpu.dot_dimension_numbers<[1], [0], [0], [1], [0, 0, 1, 1], [], []>} : vector<19x64xbf16>, vector<64x32xbf16>, vector<19x32xf32> -> vector<19x32xf32>
    %19 = arith.addf %14, %18 : vector<19x32xf32>
    %20 = vector.extract_strided_slice %5 {offsets = [0, 0], sizes = [19, 64], strides = [1, 1]} : vector<25x64xbf16> to vector<19x64xbf16>
    %c2 = arith.constant 2 : index
    %c0_19 = arith.constant 0 : index
    %c0_20 = arith.constant 0 : index
    %21 = vector.load %arg5[%c2, %c0_19, %c0_20] : memref<4x64x32xbf16, #tpu.memory_space<vmem>>, vector<1x64x32xbf16>
    %22 = vector.shape_cast %21 : vector<1x64x32xbf16> to vector<64x32xbf16>
    %cst_21 = arith.constant dense<0.000000e+00> : vector<19x32xf32>
    %23 = tpu.matmul %20, %22, %cst_21 {dimension_numbers = #tpu.dot_dimension_numbers<[1], [0], [0], [1], [0, 0, 1, 1], [], []>} : vector<19x64xbf16>, vector<64x32xbf16>, vector<19x32xf32> -> vector<19x32xf32>
    %24 = arith.addf %19, %23 : vector<19x32xf32>
    %25 = vector.extract_strided_slice %7 {offsets = [0, 0], sizes = [19, 64], strides = [1, 1]} : vector<25x64xbf16> to vector<19x64xbf16>
    %c3 = arith.constant 3 : index
    %c0_22 = arith.constant 0 : index
    %c0_23 = arith.constant 0 : index
    %26 = vector.load %arg5[%c3, %c0_22, %c0_23] : memref<4x64x32xbf16, #tpu.memory_space<vmem>>, vector<1x64x32xbf16>
    %27 = vector.shape_cast %26 : vector<1x64x32xbf16> to vector<64x32xbf16>
    %cst_24 = arith.constant dense<0.000000e+00> : vector<19x32xf32>
    %28 = tpu.matmul %25, %27, %cst_24 {dimension_numbers = #tpu.dot_dimension_numbers<[1], [0], [0], [1], [0, 0, 1, 1], [], []>} : vector<19x64xbf16>, vector<64x32xbf16>, vector<19x32xf32> -> vector<19x32xf32>
    %29 = arith.addf %24, %28 : vector<19x32xf32>
    %cst_25 = arith.constant 0.000000e+00 : f32
    %30 = vector.broadcast %cst_25 : f32 to vector<19x32xf32>
    %31 = arith.maximumf %29, %30 : vector<19x32xf32>
    %32 = arith.truncf %31 : vector<19x32xf32> to vector<19x32xbf16>
    %c0_26 = arith.constant 0 : index
    %c0_27 = arith.constant 0 : index
    %33 = vector.load %arg6[%c0_26, %c0_27] : memref<1x32xf32, #tpu.memory_space<vmem>>, vector<1x32xf32>
    %34 = vector.extract_strided_slice %3 {offsets = [0, 0], sizes = [19, 64], strides = [1, 1]} : vector<25x64xbf16> to vector<19x64xbf16>
    %c0_28 = arith.constant 0 : index
    %c0_29 = arith.constant 0 : index
    %c0_30 = arith.constant 0 : index
    %35 = vector.load %arg5[%c0_28, %c0_29, %c0_30] : memref<4x64x32xbf16, #tpu.memory_space<vmem>>, vector<1x64x32xbf16>
    %36 = vector.shape_cast %35 : vector<1x64x32xbf16> to vector<64x32xbf16>
    %cst_31 = arith.constant dense<0.000000e+00> : vector<19x32xf32>
    %37 = tpu.matmul %34, %36, %cst_31 {dimension_numbers = #tpu.dot_dimension_numbers<[1], [0], [0], [1], [0, 0, 1, 1], [], []>} : vector<19x64xbf16>, vector<64x32xbf16>, vector<19x32xf32> -> vector<19x32xf32>
    %38 = vector.broadcast %33 : vector<1x32xf32> to vector<19x32xf32>
    %39 = arith.addf %38, %37 : vector<19x32xf32>
    %40 = vector.extract_strided_slice %1 {offsets = [1, 0], sizes = [19, 64], strides = [1, 1]} : vector<25x64xbf16> to vector<19x64xbf16>
    %c1_32 = arith.constant 1 : index
    %c0_33 = arith.constant 0 : index
    %c0_34 = arith.constant 0 : index
    %41 = vector.load %arg5[%c1_32, %c0_33, %c0_34] : memref<4x64x32xbf16, #tpu.memory_space<vmem>>, vector<1x64x32xbf16>
    %42 = vector.shape_cast %41 : vector<1x64x32xbf16> to vector<64x32xbf16>
    %cst_35 = arith.constant dense<0.000000e+00> : vector<19x32xf32>
    %43 = tpu.matmul %40, %42, %cst_35 {dimension_numbers = #tpu.dot_dimension_numbers<[1], [0], [0], [1], [0, 0, 1, 1], [], []>} : vector<19x64xbf16>, vector<64x32xbf16>, vector<19x32xf32> -> vector<19x32xf32>
    %44 = arith.addf %39, %43 : vector<19x32xf32>
    %45 = vector.extract_strided_slice %7 {offsets = [0, 0], sizes = [19, 64], strides = [1, 1]} : vector<25x64xbf16> to vector<19x64xbf16>
    %c2_36 = arith.constant 2 : index
    %c0_37 = arith.constant 0 : index
    %c0_38 = arith.constant 0 : index
    %46 = vector.load %arg5[%c2_36, %c0_37, %c0_38] : memref<4x64x32xbf16, #tpu.memory_space<vmem>>, vector<1x64x32xbf16>
    %47 = vector.shape_cast %46 : vector<1x64x32xbf16> to vector<64x32xbf16>
    %cst_39 = arith.constant dense<0.000000e+00> : vector<19x32xf32>
    %48 = tpu.matmul %45, %47, %cst_39 {dimension_numbers = #tpu.dot_dimension_numbers<[1], [0], [0], [1], [0, 0, 1, 1], [], []>} : vector<19x64xbf16>, vector<64x32xbf16>, vector<19x32xf32> -> vector<19x32xf32>
    %49 = arith.addf %44, %48 : vector<19x32xf32>
    %50 = vector.extract_strided_slice %5 {offsets = [1, 0], sizes = [19, 64], strides = [1, 1]} : vector<25x64xbf16> to vector<19x64xbf16>
    %c3_40 = arith.constant 3 : index
    %c0_41 = arith.constant 0 : index
    %c0_42 = arith.constant 0 : index
    %51 = vector.load %arg5[%c3_40, %c0_41, %c0_42] : memref<4x64x32xbf16, #tpu.memory_space<vmem>>, vector<1x64x32xbf16>
    %52 = vector.shape_cast %51 : vector<1x64x32xbf16> to vector<64x32xbf16>
    %cst_43 = arith.constant dense<0.000000e+00> : vector<19x32xf32>
    %53 = tpu.matmul %50, %52, %cst_43 {dimension_numbers = #tpu.dot_dimension_numbers<[1], [0], [0], [1], [0, 0, 1, 1], [], []>} : vector<19x64xbf16>, vector<64x32xbf16>, vector<19x32xf32> -> vector<19x32xf32>
    %54 = arith.addf %49, %53 : vector<19x32xf32>
    %cst_44 = arith.constant 0.000000e+00 : f32
    %55 = vector.broadcast %cst_44 : f32 to vector<19x32xf32>
    %56 = arith.maximumf %54, %55 : vector<19x32xf32>
    %57 = arith.truncf %56 : vector<19x32xf32> to vector<19x32xbf16>
    %c0_45 = arith.constant 0 : index
    %c0_46 = arith.constant 0 : index
    %58 = vector.load %arg6[%c0_45, %c0_46] : memref<1x32xf32, #tpu.memory_space<vmem>>, vector<1x32xf32>
    %59 = vector.extract_strided_slice %5 {offsets = [0, 0], sizes = [19, 64], strides = [1, 1]} : vector<25x64xbf16> to vector<19x64xbf16>
    %c0_47 = arith.constant 0 : index
    %c0_48 = arith.constant 0 : index
    %c0_49 = arith.constant 0 : index
    %60 = vector.load %arg5[%c0_47, %c0_48, %c0_49] : memref<4x64x32xbf16, #tpu.memory_space<vmem>>, vector<1x64x32xbf16>
    %61 = vector.shape_cast %60 : vector<1x64x32xbf16> to vector<64x32xbf16>
    %cst_50 = arith.constant dense<0.000000e+00> : vector<19x32xf32>
    %62 = tpu.matmul %59, %61, %cst_50 {dimension_numbers = #tpu.dot_dimension_numbers<[1], [0], [0], [1], [0, 0, 1, 1], [], []>} : vector<19x64xbf16>, vector<64x32xbf16>, vector<19x32xf32> -> vector<19x32xf32>
    %63 = vector.broadcast %58 : vector<1x32xf32> to vector<19x32xf32>
    %64 = arith.addf %63, %62 : vector<19x32xf32>
    %65 = vector.extract_strided_slice %7 {offsets = [0, 0], sizes = [19, 64], strides = [1, 1]} : vector<25x64xbf16> to vector<19x64xbf16>
    %c1_51 = arith.constant 1 : index
    %c0_52 = arith.constant 0 : index
    %c0_53 = arith.constant 0 : index
    %66 = vector.load %arg5[%c1_51, %c0_52, %c0_53] : memref<4x64x32xbf16, #tpu.memory_space<vmem>>, vector<1x64x32xbf16>
    %67 = vector.shape_cast %66 : vector<1x64x32xbf16> to vector<64x32xbf16>
    %cst_54 = arith.constant dense<0.000000e+00> : vector<19x32xf32>
    %68 = tpu.matmul %65, %67, %cst_54 {dimension_numbers = #tpu.dot_dimension_numbers<[1], [0], [0], [1], [0, 0, 1, 1], [], []>} : vector<19x64xbf16>, vector<64x32xbf16>, vector<19x32xf32> -> vector<19x32xf32>
    %69 = arith.addf %64, %68 : vector<19x32xf32>
    %70 = vector.extract_strided_slice %1 {offsets = [5, 0], sizes = [19, 64], strides = [1, 1]} : vector<25x64xbf16> to vector<19x64xbf16>
    %c2_55 = arith.constant 2 : index
    %c0_56 = arith.constant 0 : index
    %c0_57 = arith.constant 0 : index
    %71 = vector.load %arg5[%c2_55, %c0_56, %c0_57] : memref<4x64x32xbf16, #tpu.memory_space<vmem>>, vector<1x64x32xbf16>
    %72 = vector.shape_cast %71 : vector<1x64x32xbf16> to vector<64x32xbf16>
    %cst_58 = arith.constant dense<0.000000e+00> : vector<19x32xf32>
    %73 = tpu.matmul %70, %72, %cst_58 {dimension_numbers = #tpu.dot_dimension_numbers<[1], [0], [0], [1], [0, 0, 1, 1], [], []>} : vector<19x64xbf16>, vector<64x32xbf16>, vector<19x32xf32> -> vector<19x32xf32>
    %74 = arith.addf %69, %73 : vector<19x32xf32>
    %75 = vector.extract_strided_slice %3 {offsets = [5, 0], sizes = [19, 64], strides = [1, 1]} : vector<25x64xbf16> to vector<19x64xbf16>
    %c3_59 = arith.constant 3 : index
    %c0_60 = arith.constant 0 : index
    %c0_61 = arith.constant 0 : index
    %76 = vector.load %arg5[%c3_59, %c0_60, %c0_61] : memref<4x64x32xbf16, #tpu.memory_space<vmem>>, vector<1x64x32xbf16>
    %77 = vector.shape_cast %76 : vector<1x64x32xbf16> to vector<64x32xbf16>
    %cst_62 = arith.constant dense<0.000000e+00> : vector<19x32xf32>
    %78 = tpu.matmul %75, %77, %cst_62 {dimension_numbers = #tpu.dot_dimension_numbers<[1], [0], [0], [1], [0, 0, 1, 1], [], []>} : vector<19x64xbf16>, vector<64x32xbf16>, vector<19x32xf32> -> vector<19x32xf32>
    %79 = arith.addf %74, %78 : vector<19x32xf32>
    %cst_63 = arith.constant 0.000000e+00 : f32
    %80 = vector.broadcast %cst_63 : f32 to vector<19x32xf32>
    %81 = arith.maximumf %79, %80 : vector<19x32xf32>
    %82 = arith.truncf %81 : vector<19x32xf32> to vector<19x32xbf16>
    %c0_64 = arith.constant 0 : index
    %c0_65 = arith.constant 0 : index
    %83 = vector.load %arg6[%c0_64, %c0_65] : memref<1x32xf32, #tpu.memory_space<vmem>>, vector<1x32xf32>
    %84 = vector.extract_strided_slice %7 {offsets = [0, 0], sizes = [19, 64], strides = [1, 1]} : vector<25x64xbf16> to vector<19x64xbf16>
    %c0_66 = arith.constant 0 : index
    %c0_67 = arith.constant 0 : index
    %c0_68 = arith.constant 0 : index
    %85 = vector.load %arg5[%c0_66, %c0_67, %c0_68] : memref<4x64x32xbf16, #tpu.memory_space<vmem>>, vector<1x64x32xbf16>
    %86 = vector.shape_cast %85 : vector<1x64x32xbf16> to vector<64x32xbf16>
    %cst_69 = arith.constant dense<0.000000e+00> : vector<19x32xf32>
    %87 = tpu.matmul %84, %86, %cst_69 {dimension_numbers = #tpu.dot_dimension_numbers<[1], [0], [0], [1], [0, 0, 1, 1], [], []>} : vector<19x64xbf16>, vector<64x32xbf16>, vector<19x32xf32> -> vector<19x32xf32>
    %88 = vector.broadcast %83 : vector<1x32xf32> to vector<19x32xf32>
    %89 = arith.addf %88, %87 : vector<19x32xf32>
    %90 = vector.extract_strided_slice %5 {offsets = [1, 0], sizes = [19, 64], strides = [1, 1]} : vector<25x64xbf16> to vector<19x64xbf16>
    %c1_70 = arith.constant 1 : index
    %c0_71 = arith.constant 0 : index
    %c0_72 = arith.constant 0 : index
    %91 = vector.load %arg5[%c1_70, %c0_71, %c0_72] : memref<4x64x32xbf16, #tpu.memory_space<vmem>>, vector<1x64x32xbf16>
    %92 = vector.shape_cast %91 : vector<1x64x32xbf16> to vector<64x32xbf16>
    %cst_73 = arith.constant dense<0.000000e+00> : vector<19x32xf32>
    %93 = tpu.matmul %90, %92, %cst_73 {dimension_numbers = #tpu.dot_dimension_numbers<[1], [0], [0], [1], [0, 0, 1, 1], [], []>} : vector<19x64xbf16>, vector<64x32xbf16>, vector<19x32xf32> -> vector<19x32xf32>
    %94 = arith.addf %89, %93 : vector<19x32xf32>
    %95 = vector.extract_strided_slice %3 {offsets = [5, 0], sizes = [19, 64], strides = [1, 1]} : vector<25x64xbf16> to vector<19x64xbf16>
    %c2_74 = arith.constant 2 : index
    %c0_75 = arith.constant 0 : index
    %c0_76 = arith.constant 0 : index
    %96 = vector.load %arg5[%c2_74, %c0_75, %c0_76] : memref<4x64x32xbf16, #tpu.memory_space<vmem>>, vector<1x64x32xbf16>
    %97 = vector.shape_cast %96 : vector<1x64x32xbf16> to vector<64x32xbf16>
    %cst_77 = arith.constant dense<0.000000e+00> : vector<19x32xf32>
    %98 = tpu.matmul %95, %97, %cst_77 {dimension_numbers = #tpu.dot_dimension_numbers<[1], [0], [0], [1], [0, 0, 1, 1], [], []>} : vector<19x64xbf16>, vector<64x32xbf16>, vector<19x32xf32> -> vector<19x32xf32>
    %99 = arith.addf %94, %98 : vector<19x32xf32>
    %100 = vector.extract_strided_slice %1 {offsets = [6, 0], sizes = [19, 64], strides = [1, 1]} : vector<25x64xbf16> to vector<19x64xbf16>
    %c3_78 = arith.constant 3 : index
    %c0_79 = arith.constant 0 : index
    %c0_80 = arith.constant 0 : index
    %101 = vector.load %arg5[%c3_78, %c0_79, %c0_80] : memref<4x64x32xbf16, #tpu.memory_space<vmem>>, vector<1x64x32xbf16>
    %102 = vector.shape_cast %101 : vector<1x64x32xbf16> to vector<64x32xbf16>
    %cst_81 = arith.constant dense<0.000000e+00> : vector<19x32xf32>
    %103 = tpu.matmul %100, %102, %cst_81 {dimension_numbers = #tpu.dot_dimension_numbers<[1], [0], [0], [1], [0, 0, 1, 1], [], []>} : vector<19x64xbf16>, vector<64x32xbf16>, vector<19x32xf32> -> vector<19x32xf32>
    %104 = arith.addf %99, %103 : vector<19x32xf32>
    %cst_82 = arith.constant 0.000000e+00 : f32
    %105 = vector.broadcast %cst_82 : f32 to vector<19x32xf32>
    %106 = arith.maximumf %104, %105 : vector<19x32xf32>
    %107 = arith.truncf %106 : vector<19x32xf32> to vector<19x32xbf16>
    %c0_83 = arith.constant 0 : index
    %c0_84 = arith.constant 0 : index
    %108 = vector.load %arg8[%c0_83, %c0_84] : memref<1x64xf32, #tpu.memory_space<vmem>>, vector<1x64xf32>
    %109 = vector.extract_strided_slice %32 {offsets = [0, 0], sizes = [13, 32], strides = [1, 1]} : vector<19x32xbf16> to vector<13x32xbf16>
    %c0_85 = arith.constant 0 : index
    %c0_86 = arith.constant 0 : index
    %c0_87 = arith.constant 0 : index
    %110 = vector.load %arg7[%c0_85, %c0_86, %c0_87] : memref<16x32x64xbf16, #tpu.memory_space<vmem>>, vector<1x32x64xbf16>
    %111 = vector.shape_cast %110 : vector<1x32x64xbf16> to vector<32x64xbf16>
    %cst_88 = arith.constant dense<0.000000e+00> : vector<13x64xf32>
    %112 = tpu.matmul %109, %111, %cst_88 {dimension_numbers = #tpu.dot_dimension_numbers<[1], [0], [0], [1], [0, 0, 1, 1], [], []>} : vector<13x32xbf16>, vector<32x64xbf16>, vector<13x64xf32> -> vector<13x64xf32>
    %113 = vector.broadcast %108 : vector<1x64xf32> to vector<13x64xf32>
    %114 = arith.addf %113, %112 : vector<13x64xf32>
    %115 = vector.extract_strided_slice %57 {offsets = [0, 0], sizes = [13, 32], strides = [1, 1]} : vector<19x32xbf16> to vector<13x32xbf16>
    %c1_89 = arith.constant 1 : index
    %c0_90 = arith.constant 0 : index
    %c0_91 = arith.constant 0 : index
    %116 = vector.load %arg7[%c1_89, %c0_90, %c0_91] : memref<16x32x64xbf16, #tpu.memory_space<vmem>>, vector<1x32x64xbf16>
    %117 = vector.shape_cast %116 : vector<1x32x64xbf16> to vector<32x64xbf16>
    %cst_92 = arith.constant dense<0.000000e+00> : vector<13x64xf32>
    %118 = tpu.matmul %115, %117, %cst_92 {dimension_numbers = #tpu.dot_dimension_numbers<[1], [0], [0], [1], [0, 0, 1, 1], [], []>} : vector<13x32xbf16>, vector<32x64xbf16>, vector<13x64xf32> -> vector<13x64xf32>
    %119 = arith.addf %114, %118 : vector<13x64xf32>
    %120 = vector.extract_strided_slice %32 {offsets = [1, 0], sizes = [13, 32], strides = [1, 1]} : vector<19x32xbf16> to vector<13x32xbf16>
    %c2_93 = arith.constant 2 : index
    %c0_94 = arith.constant 0 : index
    %c0_95 = arith.constant 0 : index
    %121 = vector.load %arg7[%c2_93, %c0_94, %c0_95] : memref<16x32x64xbf16, #tpu.memory_space<vmem>>, vector<1x32x64xbf16>
    %122 = vector.shape_cast %121 : vector<1x32x64xbf16> to vector<32x64xbf16>
    %cst_96 = arith.constant dense<0.000000e+00> : vector<13x64xf32>
    %123 = tpu.matmul %120, %122, %cst_96 {dimension_numbers = #tpu.dot_dimension_numbers<[1], [0], [0], [1], [0, 0, 1, 1], [], []>} : vector<13x32xbf16>, vector<32x64xbf16>, vector<13x64xf32> -> vector<13x64xf32>
    %124 = arith.addf %119, %123 : vector<13x64xf32>
    %125 = vector.extract_strided_slice %57 {offsets = [1, 0], sizes = [13, 32], strides = [1, 1]} : vector<19x32xbf16> to vector<13x32xbf16>
    %c3_97 = arith.constant 3 : index
    %c0_98 = arith.constant 0 : index
    %c0_99 = arith.constant 0 : index
    %126 = vector.load %arg7[%c3_97, %c0_98, %c0_99] : memref<16x32x64xbf16, #tpu.memory_space<vmem>>, vector<1x32x64xbf16>
    %127 = vector.shape_cast %126 : vector<1x32x64xbf16> to vector<32x64xbf16>
    %cst_100 = arith.constant dense<0.000000e+00> : vector<13x64xf32>
    %128 = tpu.matmul %125, %127, %cst_100 {dimension_numbers = #tpu.dot_dimension_numbers<[1], [0], [0], [1], [0, 0, 1, 1], [], []>} : vector<13x32xbf16>, vector<32x64xbf16>, vector<13x64xf32> -> vector<13x64xf32>
    %129 = arith.addf %124, %128 : vector<13x64xf32>
    %130 = vector.extract_strided_slice %82 {offsets = [0, 0], sizes = [13, 32], strides = [1, 1]} : vector<19x32xbf16> to vector<13x32xbf16>
    %c4 = arith.constant 4 : index
    %c0_101 = arith.constant 0 : index
    %c0_102 = arith.constant 0 : index
    %131 = vector.load %arg7[%c4, %c0_101, %c0_102] : memref<16x32x64xbf16, #tpu.memory_space<vmem>>, vector<1x32x64xbf16>
    %132 = vector.shape_cast %131 : vector<1x32x64xbf16> to vector<32x64xbf16>
    %cst_103 = arith.constant dense<0.000000e+00> : vector<13x64xf32>
    %133 = tpu.matmul %130, %132, %cst_103 {dimension_numbers = #tpu.dot_dimension_numbers<[1], [0], [0], [1], [0, 0, 1, 1], [], []>} : vector<13x32xbf16>, vector<32x64xbf16>, vector<13x64xf32> -> vector<13x64xf32>
    %134 = arith.addf %129, %133 : vector<13x64xf32>
    %135 = vector.extract_strided_slice %107 {offsets = [0, 0], sizes = [13, 32], strides = [1, 1]} : vector<19x32xbf16> to vector<13x32xbf16>
    %c5 = arith.constant 5 : index
    %c0_104 = arith.constant 0 : index
    %c0_105 = arith.constant 0 : index
    %136 = vector.load %arg7[%c5, %c0_104, %c0_105] : memref<16x32x64xbf16, #tpu.memory_space<vmem>>, vector<1x32x64xbf16>
    %137 = vector.shape_cast %136 : vector<1x32x64xbf16> to vector<32x64xbf16>
    %cst_106 = arith.constant dense<0.000000e+00> : vector<13x64xf32>
    %138 = tpu.matmul %135, %137, %cst_106 {dimension_numbers = #tpu.dot_dimension_numbers<[1], [0], [0], [1], [0, 0, 1, 1], [], []>} : vector<13x32xbf16>, vector<32x64xbf16>, vector<13x64xf32> -> vector<13x64xf32>
    %139 = arith.addf %134, %138 : vector<13x64xf32>
    %140 = vector.extract_strided_slice %82 {offsets = [1, 0], sizes = [13, 32], strides = [1, 1]} : vector<19x32xbf16> to vector<13x32xbf16>
    %c6 = arith.constant 6 : index
    %c0_107 = arith.constant 0 : index
    %c0_108 = arith.constant 0 : index
    %141 = vector.load %arg7[%c6, %c0_107, %c0_108] : memref<16x32x64xbf16, #tpu.memory_space<vmem>>, vector<1x32x64xbf16>
    %142 = vector.shape_cast %141 : vector<1x32x64xbf16> to vector<32x64xbf16>
    %cst_109 = arith.constant dense<0.000000e+00> : vector<13x64xf32>
    %143 = tpu.matmul %140, %142, %cst_109 {dimension_numbers = #tpu.dot_dimension_numbers<[1], [0], [0], [1], [0, 0, 1, 1], [], []>} : vector<13x32xbf16>, vector<32x64xbf16>, vector<13x64xf32> -> vector<13x64xf32>
    %144 = arith.addf %139, %143 : vector<13x64xf32>
    %145 = vector.extract_strided_slice %107 {offsets = [1, 0], sizes = [13, 32], strides = [1, 1]} : vector<19x32xbf16> to vector<13x32xbf16>
    %c7 = arith.constant 7 : index
    %c0_110 = arith.constant 0 : index
    %c0_111 = arith.constant 0 : index
    %146 = vector.load %arg7[%c7, %c0_110, %c0_111] : memref<16x32x64xbf16, #tpu.memory_space<vmem>>, vector<1x32x64xbf16>
    %147 = vector.shape_cast %146 : vector<1x32x64xbf16> to vector<32x64xbf16>
    %cst_112 = arith.constant dense<0.000000e+00> : vector<13x64xf32>
    %148 = tpu.matmul %145, %147, %cst_112 {dimension_numbers = #tpu.dot_dimension_numbers<[1], [0], [0], [1], [0, 0, 1, 1], [], []>} : vector<13x32xbf16>, vector<32x64xbf16>, vector<13x64xf32> -> vector<13x64xf32>
    %149 = arith.addf %144, %148 : vector<13x64xf32>
    %150 = vector.extract_strided_slice %32 {offsets = [5, 0], sizes = [13, 32], strides = [1, 1]} : vector<19x32xbf16> to vector<13x32xbf16>
    %c8 = arith.constant 8 : index
    %c0_113 = arith.constant 0 : index
    %c0_114 = arith.constant 0 : index
    %151 = vector.load %arg7[%c8, %c0_113, %c0_114] : memref<16x32x64xbf16, #tpu.memory_space<vmem>>, vector<1x32x64xbf16>
    %152 = vector.shape_cast %151 : vector<1x32x64xbf16> to vector<32x64xbf16>
    %cst_115 = arith.constant dense<0.000000e+00> : vector<13x64xf32>
    %153 = tpu.matmul %150, %152, %cst_115 {dimension_numbers = #tpu.dot_dimension_numbers<[1], [0], [0], [1], [0, 0, 1, 1], [], []>} : vector<13x32xbf16>, vector<32x64xbf16>, vector<13x64xf32> -> vector<13x64xf32>
    %154 = arith.addf %149, %153 : vector<13x64xf32>
    %155 = vector.extract_strided_slice %57 {offsets = [5, 0], sizes = [13, 32], strides = [1, 1]} : vector<19x32xbf16> to vector<13x32xbf16>
    %c9 = arith.constant 9 : index
    %c0_116 = arith.constant 0 : index
    %c0_117 = arith.constant 0 : index
    %156 = vector.load %arg7[%c9, %c0_116, %c0_117] : memref<16x32x64xbf16, #tpu.memory_space<vmem>>, vector<1x32x64xbf16>
    %157 = vector.shape_cast %156 : vector<1x32x64xbf16> to vector<32x64xbf16>
    %cst_118 = arith.constant dense<0.000000e+00> : vector<13x64xf32>
    %158 = tpu.matmul %155, %157, %cst_118 {dimension_numbers = #tpu.dot_dimension_numbers<[1], [0], [0], [1], [0, 0, 1, 1], [], []>} : vector<13x32xbf16>, vector<32x64xbf16>, vector<13x64xf32> -> vector<13x64xf32>
    %159 = arith.addf %154, %158 : vector<13x64xf32>
    %160 = vector.extract_strided_slice %32 {offsets = [6, 0], sizes = [13, 32], strides = [1, 1]} : vector<19x32xbf16> to vector<13x32xbf16>
    %c10 = arith.constant 10 : index
    %c0_119 = arith.constant 0 : index
    %c0_120 = arith.constant 0 : index
    %161 = vector.load %arg7[%c10, %c0_119, %c0_120] : memref<16x32x64xbf16, #tpu.memory_space<vmem>>, vector<1x32x64xbf16>
    %162 = vector.shape_cast %161 : vector<1x32x64xbf16> to vector<32x64xbf16>
    %cst_121 = arith.constant dense<0.000000e+00> : vector<13x64xf32>
    %163 = tpu.matmul %160, %162, %cst_121 {dimension_numbers = #tpu.dot_dimension_numbers<[1], [0], [0], [1], [0, 0, 1, 1], [], []>} : vector<13x32xbf16>, vector<32x64xbf16>, vector<13x64xf32> -> vector<13x64xf32>
    %164 = arith.addf %159, %163 : vector<13x64xf32>
    %165 = vector.extract_strided_slice %57 {offsets = [6, 0], sizes = [13, 32], strides = [1, 1]} : vector<19x32xbf16> to vector<13x32xbf16>
    %c11 = arith.constant 11 : index
    %c0_122 = arith.constant 0 : index
    %c0_123 = arith.constant 0 : index
    %166 = vector.load %arg7[%c11, %c0_122, %c0_123] : memref<16x32x64xbf16, #tpu.memory_space<vmem>>, vector<1x32x64xbf16>
    %167 = vector.shape_cast %166 : vector<1x32x64xbf16> to vector<32x64xbf16>
    %cst_124 = arith.constant dense<0.000000e+00> : vector<13x64xf32>
    %168 = tpu.matmul %165, %167, %cst_124 {dimension_numbers = #tpu.dot_dimension_numbers<[1], [0], [0], [1], [0, 0, 1, 1], [], []>} : vector<13x32xbf16>, vector<32x64xbf16>, vector<13x64xf32> -> vector<13x64xf32>
    %169 = arith.addf %164, %168 : vector<13x64xf32>
    %170 = vector.extract_strided_slice %82 {offsets = [5, 0], sizes = [13, 32], strides = [1, 1]} : vector<19x32xbf16> to vector<13x32xbf16>
    %c12 = arith.constant 12 : index
    %c0_125 = arith.constant 0 : index
    %c0_126 = arith.constant 0 : index
    %171 = vector.load %arg7[%c12, %c0_125, %c0_126] : memref<16x32x64xbf16, #tpu.memory_space<vmem>>, vector<1x32x64xbf16>
    %172 = vector.shape_cast %171 : vector<1x32x64xbf16> to vector<32x64xbf16>
    %cst_127 = arith.constant dense<0.000000e+00> : vector<13x64xf32>
    %173 = tpu.matmul %170, %172, %cst_127 {dimension_numbers = #tpu.dot_dimension_numbers<[1], [0], [0], [1], [0, 0, 1, 1], [], []>} : vector<13x32xbf16>, vector<32x64xbf16>, vector<13x64xf32> -> vector<13x64xf32>
    %174 = arith.addf %169, %173 : vector<13x64xf32>
    %175 = vector.extract_strided_slice %107 {offsets = [5, 0], sizes = [13, 32], strides = [1, 1]} : vector<19x32xbf16> to vector<13x32xbf16>
    %c13 = arith.constant 13 : index
    %c0_128 = arith.constant 0 : index
    %c0_129 = arith.constant 0 : index
    %176 = vector.load %arg7[%c13, %c0_128, %c0_129] : memref<16x32x64xbf16, #tpu.memory_space<vmem>>, vector<1x32x64xbf16>
    %177 = vector.shape_cast %176 : vector<1x32x64xbf16> to vector<32x64xbf16>
    %cst_130 = arith.constant dense<0.000000e+00> : vector<13x64xf32>
    %178 = tpu.matmul %175, %177, %cst_130 {dimension_numbers = #tpu.dot_dimension_numbers<[1], [0], [0], [1], [0, 0, 1, 1], [], []>} : vector<13x32xbf16>, vector<32x64xbf16>, vector<13x64xf32> -> vector<13x64xf32>
    %179 = arith.addf %174, %178 : vector<13x64xf32>
    %180 = vector.extract_strided_slice %82 {offsets = [6, 0], sizes = [13, 32], strides = [1, 1]} : vector<19x32xbf16> to vector<13x32xbf16>
    %c14 = arith.constant 14 : index
    %c0_131 = arith.constant 0 : index
    %c0_132 = arith.constant 0 : index
    %181 = vector.load %arg7[%c14, %c0_131, %c0_132] : memref<16x32x64xbf16, #tpu.memory_space<vmem>>, vector<1x32x64xbf16>
    %182 = vector.shape_cast %181 : vector<1x32x64xbf16> to vector<32x64xbf16>
    %cst_133 = arith.constant dense<0.000000e+00> : vector<13x64xf32>
    %183 = tpu.matmul %180, %182, %cst_133 {dimension_numbers = #tpu.dot_dimension_numbers<[1], [0], [0], [1], [0, 0, 1, 1], [], []>} : vector<13x32xbf16>, vector<32x64xbf16>, vector<13x64xf32> -> vector<13x64xf32>
    %184 = arith.addf %179, %183 : vector<13x64xf32>
    %185 = vector.extract_strided_slice %107 {offsets = [6, 0], sizes = [13, 32], strides = [1, 1]} : vector<19x32xbf16> to vector<13x32xbf16>
    %c15 = arith.constant 15 : index
    %c0_134 = arith.constant 0 : index
    %c0_135 = arith.constant 0 : index
    %186 = vector.load %arg7[%c15, %c0_134, %c0_135] : memref<16x32x64xbf16, #tpu.memory_space<vmem>>, vector<1x32x64xbf16>
    %187 = vector.shape_cast %186 : vector<1x32x64xbf16> to vector<32x64xbf16>
    %cst_136 = arith.constant dense<0.000000e+00> : vector<13x64xf32>
    %188 = tpu.matmul %185, %187, %cst_136 {dimension_numbers = #tpu.dot_dimension_numbers<[1], [0], [0], [1], [0, 0, 1, 1], [], []>} : vector<13x32xbf16>, vector<32x64xbf16>, vector<13x64xf32> -> vector<13x64xf32>
    %189 = arith.addf %184, %188 : vector<13x64xf32>
    %cst_137 = arith.constant 0.000000e+00 : f32
    %190 = vector.broadcast %cst_137 : f32 to vector<13x64xf32>
    %191 = arith.maximumf %189, %190 : vector<13x64xf32>
    %192 = arith.truncf %191 : vector<13x64xf32> to vector<13x64xbf16>
    %c0_138 = arith.constant 0 : index
    %c0_139 = arith.constant 0 : index
    %193 = vector.load %arg10[%c0_138, %c0_139] : memref<1x64xf32, #tpu.memory_space<vmem>>, vector<1x64xf32>
    %194 = vector.extract_strided_slice %192 {offsets = [0, 0], sizes = [1, 64], strides = [1, 1]} : vector<13x64xbf16> to vector<1x64xbf16>
    %c0_140 = arith.constant 0 : index
    %c0_141 = arith.constant 0 : index
    %c0_142 = arith.constant 0 : index
    %195 = vector.load %arg9[%c0_140, %c0_141, %c0_142] : memref<9x64x64xbf16, #tpu.memory_space<vmem>>, vector<1x64x64xbf16>
    %196 = vector.shape_cast %195 : vector<1x64x64xbf16> to vector<64x64xbf16>
    %cst_143 = arith.constant dense<0.000000e+00> : vector<1x64xf32>
    %197 = tpu.matmul %194, %196, %cst_143 {dimension_numbers = #tpu.dot_dimension_numbers<[1], [0], [0], [1], [0, 0, 1, 1], [], []>} : vector<1x64xbf16>, vector<64x64xbf16>, vector<1x64xf32> -> vector<1x64xf32>
    %198 = arith.addf %193, %197 : vector<1x64xf32>
    %199 = vector.extract_strided_slice %192 {offsets = [1, 0], sizes = [1, 64], strides = [1, 1]} : vector<13x64xbf16> to vector<1x64xbf16>
    %c1_144 = arith.constant 1 : index
    %c0_145 = arith.constant 0 : index
    %c0_146 = arith.constant 0 : index
    %200 = vector.load %arg9[%c1_144, %c0_145, %c0_146] : memref<9x64x64xbf16, #tpu.memory_space<vmem>>, vector<1x64x64xbf16>
    %201 = vector.shape_cast %200 : vector<1x64x64xbf16> to vector<64x64xbf16>
    %cst_147 = arith.constant dense<0.000000e+00> : vector<1x64xf32>
    %202 = tpu.matmul %199, %201, %cst_147 {dimension_numbers = #tpu.dot_dimension_numbers<[1], [0], [0], [1], [0, 0, 1, 1], [], []>} : vector<1x64xbf16>, vector<64x64xbf16>, vector<1x64xf32> -> vector<1x64xf32>
    %203 = arith.addf %198, %202 : vector<1x64xf32>
    %204 = vector.extract_strided_slice %192 {offsets = [2, 0], sizes = [1, 64], strides = [1, 1]} : vector<13x64xbf16> to vector<1x64xbf16>
    %c2_148 = arith.constant 2 : index
    %c0_149 = arith.constant 0 : index
    %c0_150 = arith.constant 0 : index
    %205 = vector.load %arg9[%c2_148, %c0_149, %c0_150] : memref<9x64x64xbf16, #tpu.memory_space<vmem>>, vector<1x64x64xbf16>
    %206 = vector.shape_cast %205 : vector<1x64x64xbf16> to vector<64x64xbf16>
    %cst_151 = arith.constant dense<0.000000e+00> : vector<1x64xf32>
    %207 = tpu.matmul %204, %206, %cst_151 {dimension_numbers = #tpu.dot_dimension_numbers<[1], [0], [0], [1], [0, 0, 1, 1], [], []>} : vector<1x64xbf16>, vector<64x64xbf16>, vector<1x64xf32> -> vector<1x64xf32>
    %208 = arith.addf %203, %207 : vector<1x64xf32>
    %209 = vector.extract_strided_slice %192 {offsets = [5, 0], sizes = [1, 64], strides = [1, 1]} : vector<13x64xbf16> to vector<1x64xbf16>
    %c3_152 = arith.constant 3 : index
    %c0_153 = arith.constant 0 : index
    %c0_154 = arith.constant 0 : index
    %210 = vector.load %arg9[%c3_152, %c0_153, %c0_154] : memref<9x64x64xbf16, #tpu.memory_space<vmem>>, vector<1x64x64xbf16>
    %211 = vector.shape_cast %210 : vector<1x64x64xbf16> to vector<64x64xbf16>
    %cst_155 = arith.constant dense<0.000000e+00> : vector<1x64xf32>
    %212 = tpu.matmul %209, %211, %cst_155 {dimension_numbers = #tpu.dot_dimension_numbers<[1], [0], [0], [1], [0, 0, 1, 1], [], []>} : vector<1x64xbf16>, vector<64x64xbf16>, vector<1x64xf32> -> vector<1x64xf32>
    %213 = arith.addf %208, %212 : vector<1x64xf32>
    %214 = vector.extract_strided_slice %192 {offsets = [6, 0], sizes = [1, 64], strides = [1, 1]} : vector<13x64xbf16> to vector<1x64xbf16>
    %c4_156 = arith.constant 4 : index
    %c0_157 = arith.constant 0 : index
    %c0_158 = arith.constant 0 : index
    %215 = vector.load %arg9[%c4_156, %c0_157, %c0_158] : memref<9x64x64xbf16, #tpu.memory_space<vmem>>, vector<1x64x64xbf16>
    %216 = vector.shape_cast %215 : vector<1x64x64xbf16> to vector<64x64xbf16>
    %cst_159 = arith.constant dense<0.000000e+00> : vector<1x64xf32>
    %217 = tpu.matmul %214, %216, %cst_159 {dimension_numbers = #tpu.dot_dimension_numbers<[1], [0], [0], [1], [0, 0, 1, 1], [], []>} : vector<1x64xbf16>, vector<64x64xbf16>, vector<1x64xf32> -> vector<1x64xf32>
    %218 = arith.addf %213, %217 : vector<1x64xf32>
    %219 = vector.extract_strided_slice %192 {offsets = [7, 0], sizes = [1, 64], strides = [1, 1]} : vector<13x64xbf16> to vector<1x64xbf16>
    %c5_160 = arith.constant 5 : index
    %c0_161 = arith.constant 0 : index
    %c0_162 = arith.constant 0 : index
    %220 = vector.load %arg9[%c5_160, %c0_161, %c0_162] : memref<9x64x64xbf16, #tpu.memory_space<vmem>>, vector<1x64x64xbf16>
    %221 = vector.shape_cast %220 : vector<1x64x64xbf16> to vector<64x64xbf16>
    %cst_163 = arith.constant dense<0.000000e+00> : vector<1x64xf32>
    %222 = tpu.matmul %219, %221, %cst_163 {dimension_numbers = #tpu.dot_dimension_numbers<[1], [0], [0], [1], [0, 0, 1, 1], [], []>} : vector<1x64xbf16>, vector<64x64xbf16>, vector<1x64xf32> -> vector<1x64xf32>
    %223 = arith.addf %218, %222 : vector<1x64xf32>
    %224 = vector.extract_strided_slice %192 {offsets = [10, 0], sizes = [1, 64], strides = [1, 1]} : vector<13x64xbf16> to vector<1x64xbf16>
    %c6_164 = arith.constant 6 : index
    %c0_165 = arith.constant 0 : index
    %c0_166 = arith.constant 0 : index
    %225 = vector.load %arg9[%c6_164, %c0_165, %c0_166] : memref<9x64x64xbf16, #tpu.memory_space<vmem>>, vector<1x64x64xbf16>
    %226 = vector.shape_cast %225 : vector<1x64x64xbf16> to vector<64x64xbf16>
    %cst_167 = arith.constant dense<0.000000e+00> : vector<1x64xf32>
    %227 = tpu.matmul %224, %226, %cst_167 {dimension_numbers = #tpu.dot_dimension_numbers<[1], [0], [0], [1], [0, 0, 1, 1], [], []>} : vector<1x64xbf16>, vector<64x64xbf16>, vector<1x64xf32> -> vector<1x64xf32>
    %228 = arith.addf %223, %227 : vector<1x64xf32>
    %229 = vector.extract_strided_slice %192 {offsets = [11, 0], sizes = [1, 64], strides = [1, 1]} : vector<13x64xbf16> to vector<1x64xbf16>
    %c7_168 = arith.constant 7 : index
    %c0_169 = arith.constant 0 : index
    %c0_170 = arith.constant 0 : index
    %230 = vector.load %arg9[%c7_168, %c0_169, %c0_170] : memref<9x64x64xbf16, #tpu.memory_space<vmem>>, vector<1x64x64xbf16>
    %231 = vector.shape_cast %230 : vector<1x64x64xbf16> to vector<64x64xbf16>
    %cst_171 = arith.constant dense<0.000000e+00> : vector<1x64xf32>
    %232 = tpu.matmul %229, %231, %cst_171 {dimension_numbers = #tpu.dot_dimension_numbers<[1], [0], [0], [1], [0, 0, 1, 1], [], []>} : vector<1x64xbf16>, vector<64x64xbf16>, vector<1x64xf32> -> vector<1x64xf32>
    %233 = arith.addf %228, %232 : vector<1x64xf32>
    %234 = vector.extract_strided_slice %192 {offsets = [12, 0], sizes = [1, 64], strides = [1, 1]} : vector<13x64xbf16> to vector<1x64xbf16>
    %c8_172 = arith.constant 8 : index
    %c0_173 = arith.constant 0 : index
    %c0_174 = arith.constant 0 : index
    %235 = vector.load %arg9[%c8_172, %c0_173, %c0_174] : memref<9x64x64xbf16, #tpu.memory_space<vmem>>, vector<1x64x64xbf16>
    %236 = vector.shape_cast %235 : vector<1x64x64xbf16> to vector<64x64xbf16>
    %cst_175 = arith.constant dense<0.000000e+00> : vector<1x64xf32>
    %237 = tpu.matmul %234, %236, %cst_175 {dimension_numbers = #tpu.dot_dimension_numbers<[1], [0], [0], [1], [0, 0, 1, 1], [], []>} : vector<1x64xbf16>, vector<64x64xbf16>, vector<1x64xf32> -> vector<1x64xf32>
    %238 = arith.addf %233, %237 : vector<1x64xf32>
    %cst_176 = arith.constant 0.000000e+00 : f32
    %239 = vector.broadcast %cst_176 : f32 to vector<1x64xf32>
    %240 = arith.maximumf %238, %239 : vector<1x64xf32>
    %241 = arith.truncf %240 : vector<1x64xf32> to vector<1x64xbf16>
    %c0_177 = arith.constant 0 : index
    %c0_178 = arith.constant 0 : index
    %242 = vector.load %arg12[%c0_177, %c0_178] : memref<1x512xf32, #tpu.memory_space<vmem>>, vector<1x512xf32>
    %c0_179 = arith.constant 0 : index
    %c0_180 = arith.constant 0 : index
    %c0_181 = arith.constant 0 : index
    %243 = vector.load %arg11[%c0_179, %c0_180, %c0_181] : memref<1x64x512xbf16, #tpu.memory_space<vmem>>, vector<1x64x512xbf16>
    %244 = vector.shape_cast %243 : vector<1x64x512xbf16> to vector<64x512xbf16>
    %cst_182 = arith.constant dense<0.000000e+00> : vector<1x512xf32>
    %245 = tpu.matmul %241, %244, %cst_182 {dimension_numbers = #tpu.dot_dimension_numbers<[1], [0], [0], [1], [0, 0, 1, 1], [], []>} : vector<1x64xbf16>, vector<64x512xbf16>, vector<1x512xf32> -> vector<1x512xf32>
    %246 = arith.addf %242, %245 : vector<1x512xf32>
    %cst_183 = arith.constant 0.000000e+00 : f32
    %247 = vector.broadcast %cst_183 : f32 to vector<1x512xf32>
    %248 = arith.maximumf %246, %247 : vector<1x512xf32>
    %249 = arith.truncf %248 : vector<1x512xf32> to vector<1x512xbf16>
    %c0_184 = arith.constant 0 : index
    %c0_185 = arith.constant 0 : index
    %250 = vector.load %arg13[%c0_184, %c0_185] : memref<512x128xbf16, #tpu.memory_space<vmem>>, vector<512x128xbf16>
    %cst_186 = arith.constant dense<0.000000e+00> : vector<1x128xf32>
    %251 = tpu.matmul %249, %250, %cst_186 {dimension_numbers = #tpu.dot_dimension_numbers<[1], [0], [0], [1], [0, 0, 1, 1], [], []>} : vector<1x512xbf16>, vector<512x128xbf16>, vector<1x128xf32> -> vector<1x128xf32>
    %c0_187 = arith.constant 0 : index
    %c0_188 = arith.constant 0 : index
    %252 = vector.load %arg14[%c0_187, %c0_188] : memref<1x128xf32, #tpu.memory_space<vmem>>, vector<1x128xf32>
    %253 = arith.addf %251, %252 : vector<1x128xf32>
    %cst_189 = arith.constant dense<0xFF800000> : vector<1xf32>
    %254 = vector.multi_reduction <maximumf>, %253, %cst_189 [1] : vector<1x128xf32> to vector<1xf32>
    %255 = vector.shape_cast %254 : vector<1xf32> to vector<1x1xf32>
    %256 = vector.broadcast %255 : vector<1x1xf32> to vector<1x128xf32>
    %257 = arith.subf %253, %256 : vector<1x128xf32>
    %258 = math.exp %257 : vector<1x128xf32>
    %cst_190 = arith.constant dense<0.000000e+00> : vector<1xf32>
    %259 = vector.multi_reduction <add>, %258, %cst_190 [1] : vector<1x128xf32> to vector<1xf32>
    %260 = vector.shape_cast %259 : vector<1xf32> to vector<1x1xf32>
    %261 = vector.broadcast %260 : vector<1x1xf32> to vector<1x128xf32>
    %262 = arith.divf %258, %261 : vector<1x128xf32>
    %c0_191 = arith.constant 0 : index
    %c0_192 = arith.constant 0 : index
    %c0_193 = arith.constant 0 : index
    %263 = vector.load %arg15[%c0_191, %c0_192, %c0_193] : memref<1x1x128xf32, #tpu.memory_space<vmem>>, vector<1x1x128xf32>
    %264 = vector.shape_cast %263 : vector<1x1x128xf32> to vector<1x128xf32>
    %265 = vector.shape_cast %262 : vector<1x128xf32> to vector<1x1x128xf32>
    tpu.vector_store %arg15[%c0_191, %c0_192, %c0_193], %265 {strides = array<i32>} : memref<1x1x128xf32, #tpu.memory_space<vmem>>, vector<1x1x128xf32>,
    return
  }
  func.func @transform_0(%arg0: i32) -> (i32, i32, i32) {
    %c0_i32 = arith.constant 0 : i32
    %c0_i32_0 = arith.constant 0 : i32
    %c0_i32_1 = arith.constant 0 : i32
    return %arg0, %c0_i32, %c0_i32_0 : i32, i32, i32
  }
  func.func @transform_1(%arg0: i32) -> (i32, i32, i32) {
    %c0_i32 = arith.constant 0 : i32
    %c0_i32_0 = arith.constant 0 : i32
    %c0_i32_1 = arith.constant 0 : i32
    return %arg0, %c0_i32, %c0_i32_0 : i32, i32, i32
  }
  func.func @transform_2(%arg0: i32) -> (i32, i32, i32) {
    %c0_i32 = arith.constant 0 : i32
    %c0_i32_0 = arith.constant 0 : i32
    %c0_i32_1 = arith.constant 0 : i32
    return %arg0, %c0_i32, %c0_i32_0 : i32, i32, i32
  }
  func.func @transform_3(%arg0: i32) -> (i32, i32, i32) {
    %c0_i32 = arith.constant 0 : i32
    %c0_i32_0 = arith.constant 0 : i32
    %c0_i32_1 = arith.constant 0 : i32
    return %arg0, %c0_i32, %c0_i32_0 : i32, i32, i32
  }
  func.func @transform_4(%arg0: i32) -> (i32, i32, i32) {
    %c0_i32 = arith.constant 0 : i32
    %c0_i32_0 = arith.constant 0 : i32
    %c0_i32_1 = arith.constant 0 : i32
    %c0_i32_2 = arith.constant 0 : i32
    return %c0_i32, %c0_i32_0, %c0_i32_1 : i32, i32, i32
  }
  func.func @transform_5(%arg0: i32) -> (i32, i32) {
    %c0_i32 = arith.constant 0 : i32
    %c0_i32_0 = arith.constant 0 : i32
    %c0_i32_1 = arith.constant 0 : i32
    return %c0_i32, %c0_i32_0 : i32, i32
  }
  func.func @transform_6(%arg0: i32) -> (i32, i32, i32) {
    %c0_i32 = arith.constant 0 : i32
    %c0_i32_0 = arith.constant 0 : i32
    %c0_i32_1 = arith.constant 0 : i32
    %c0_i32_2 = arith.constant 0 : i32
    return %c0_i32, %c0_i32_0, %c0_i32_1 : i32, i32, i32
  }
  func.func @transform_7(%arg0: i32) -> (i32, i32) {
    %c0_i32 = arith.constant 0 : i32
    %c0_i32_0 = arith.constant 0 : i32
    %c0_i32_1 = arith.constant 0 : i32
    return %c0_i32, %c0_i32_0 : i32, i32
  }
  func.func @transform_8(%arg0: i32) -> (i32, i32, i32) {
    %c0_i32 = arith.constant 0 : i32
    %c0_i32_0 = arith.constant 0 : i32
    %c0_i32_1 = arith.constant 0 : i32
    %c0_i32_2 = arith.constant 0 : i32
    return %c0_i32, %c0_i32_0, %c0_i32_1 : i32, i32, i32
  }
  func.func @transform_9(%arg0: i32) -> (i32, i32) {
    %c0_i32 = arith.constant 0 : i32
    %c0_i32_0 = arith.constant 0 : i32
    %c0_i32_1 = arith.constant 0 : i32
    return %c0_i32, %c0_i32_0 : i32, i32
  }
  func.func @transform_10(%arg0: i32) -> (i32, i32, i32) {
    %c0_i32 = arith.constant 0 : i32
    %c0_i32_0 = arith.constant 0 : i32
    %c0_i32_1 = arith.constant 0 : i32
    %c0_i32_2 = arith.constant 0 : i32
    return %c0_i32, %c0_i32_0, %c0_i32_1 : i32, i32, i32
  }
  func.func @transform_11(%arg0: i32) -> (i32, i32) {
    %c0_i32 = arith.constant 0 : i32
    %c0_i32_0 = arith.constant 0 : i32
    %c0_i32_1 = arith.constant 0 : i32
    return %c0_i32, %c0_i32_0 : i32, i32
  }
  func.func @transform_12(%arg0: i32) -> (i32, i32) {
    %c0_i32 = arith.constant 0 : i32
    %c0_i32_0 = arith.constant 0 : i32
    %c0_i32_1 = arith.constant 0 : i32
    return %c0_i32, %c0_i32_0 : i32, i32
  }
  func.func @transform_13(%arg0: i32) -> (i32, i32) {
    %c0_i32 = arith.constant 0 : i32
    %c0_i32_0 = arith.constant 0 : i32
    %c0_i32_1 = arith.constant 0 : i32
    return %c0_i32, %c0_i32_0 : i32, i32
  }
  func.func @transform_14(%arg0: i32) -> (i32, i32, i32) {
    %c0_i32 = arith.constant 0 : i32
    %c0_i32_0 = arith.constant 0 : i32
    %c0_i32_1 = arith.constant 0 : i32
    return %arg0, %c0_i32, %c0_i32_0 : i32, i32, i32
  }
}

</mosaic_0001>

<bundles_post_ra>
// kernel: atari_policy_forward.1
= control target key start
LH: loop header
LB: loop body
LE: loop exit
PB: predicated region body
PF: predicated region fallthrough
CT: control target
= control target key end

     0   :  { %s6561_s0 = inlined_call_operand.vmem [shape: bf16[2,25,64], index: 0, kind: input, shape index: {}]   ;;  %s6562_s1 = inlined_call_operand.vmem [shape: bf16[2,25,64], index: 1, kind: input, shape index: {}]   ;;  %s6563_s2 = inlined_call_operand.vmem [shape: bf16[2,25,64], index: 2, kind: input, shape index: {}]   ;;  %s6564_s3 = inlined_call_operand.vmem [shape: bf16[2,25,64], index: 3, kind: input, shape index: {}]   ;;  %s6565_s4 = inlined_call_operand.vmem [shape: bf16[4,64,32], index: 4, kind: input, shape index: {}]   ;;  %s6566_s5 = inlined_call_operand.vmem [shape: f32[1,32], index: 5, kind: input, shape index: {}]   ;;  %s6567_s6 = inlined_call_operand.vmem [shape: bf16[16,32,64], index: 6, kind: input, shape index: {}]   ;;  %s6568_s7 = inlined_call_operand.vmem [shape: f32[1,64], index: 7, kind: input, shape index: {}]   ;;  %s6569_s8 = inlined_call_operand.vmem [shape: bf16[9,64,64], index: 8, kind: input, shape index: {}]   ;;  %s6570_s9 = inlined_call_operand.vmem [shape: f32[1,64], index: 9, kind: input, shape index: {}]   ;;  %s6571_s10 = inlined_call_operand.vmem [shape: bf16[1,64,512], index: 10, kind: input, shape index: {}]   ;;  %s6572_s11 = inlined_call_operand.vmem [shape: f32[1,512], index: 11, kind: input, shape index: {}]   ;;  %s6573_s12 = inlined_call_operand.vmem [shape: bf16[512,128], index: 12, kind: input, shape index: {}]   ;;  %s6574_s13 = inlined_call_operand.vmem [shape: f32[1,128], index: 13, kind: input, shape index: {}]   ;;  %s6575_s14 = inlined_call_operand.hbm [shape: f32[2,1,128], index: 14, kind: output, shape index: {}]  }
   0x1   :  { %6580 = sst [smem:[#allocation9_spill]] %s6561_s0 }
   0x2   :  { %19 = vsyncpa [#allocation3], 0 }
   0x3   :  { %21 = vsyncpa [#allocation3 + $0x1], 0  ;;  %s5532_s29 = smov 0   ;;  %s5534_s30 = smov 0  }
   0x4   :  { %s5536_s15 = smov 0   ;;  %s5538_s16 = smov 0  }
   0x5 LB: > { %6581 = sst [smem:[#allocation5_spill]] %s5446_s15  ;;  %s5553_s17 = sadd.s32 4294967295, %s5450_s16   ;;  %s5450_s16 = sphi %s5538_s16, %s6589_s16   ;;  %s5446_s15 = sphi %s5536_s15, %s6591_s15   ;;  %s5442_s30 = sphi %s5534_s30, %s6593_s30   ;;  %s5438_s29 = sphi %s5532_s29, %s6592_s29  }
   0x6   : > { %s4164_s18 = sadd.s32 4294967294, %s5450_s16   ;;  %s5557_s19 = sadd.s32 1, %s5450_s16  }
   0x7   : > { %6582 = sst [smem:[#allocation6_spill]] %s5557_s19  ;;  %s348_s20 = sadd.s32 1, %s5446_s15 }
   0x8   : > { %s345_s21 = ssub.s32 %s5450_s16, %s5557_s19  ;;  %p358_p0 = scmp.ne.s32.totalorder %s5446_s15, %s5442_s30 }
   0x9   : > { %p346_p1 = scmp.eq.s32.totalorder %s345_s21, 0  ;;  %p359_p2 = scmp.eq.s32.totalorder %s5553_s17, 1 }
   0xa   : > { %p364_p3 = scmp.ne.s32.totalorder %s5442_s30, %s5438_s29  ;;  %p365_p4 = scmp.eq.s32.totalorder %s4164_s18, 1 }
   0xb   : > { %s5568_s22 = scalar_select %p346_p1, %s5446_s15, %s348_s20  }
   0xc   : > { %p5570_p5 = por %p359_p2, %p358_p0  ;;  %p5574_p6 = por %p365_p4, %p364_p3 }
   0xd   : > { %6583 = sst [smem:[#allocation7_spill]] %s5568_s22  ;;  %p4167_p7 = scmp.ge.s32.totalorder %s5450_s16, 1 }
   0xe   : > { %s6585_s24 = scalar_select %p5574_p6, 1, 0 }
   0xf   : > { %p445_p8 = scmp.lt.s32.totalorder %s5450_s16, 3 }
  0x10   : > { %6586 = sst [smem:[#allocation8_spill]] %s6585_s24 }
  0x11   : > { %p446_p9 = pnand %p4167_p7, %p445_p8 }
  0x12   : > { %p505_p10 = scmp.lt.s32.totalorder (!%p446_p9), %s5553_s17, 1  ;;  %s6587_s0 = sld [smem:[#allocation9_spill]] (!%p446_p9) }
  0x13   : > { %449 = sbr.rel (%p446_p9) target bundleno = 1604 (0x644), region = 76  ;;  %s4526_s27 = sshll.u32 (!%p446_p9), %s5553_s17, 4 }
  0x14   : > { %s5456_s26 = smov (!%p446_p9), [#allocation2]  }
  0x18   : > { %v5583_v0 = vld [vmem:[%s6565_s4 + $0x18] sm:$0xff]   ;;  %v5595_v2 = vld [vmem:[%s6565_s4 + $0x10] sm:$0xff]   ;;  %s506_s21 = scalar_select %p505_p10, %s5553_s17, 1  ;;  %v5610_v4 = vld [vmem:[%s6565_s4 + $0x8] sm:$0xff]   ;;  %vm580_vm0 = vcmask 523264   ;;  %vm1591_vm1 = vcmask 1044480  }
  0x19   : > { %v5589_v1 = vld [vmem:[%s6565_s4 + $0x38] sm:$0xff]   ;;  %4766 = vmatprep.subr.bf16.mxu0 %v5583_v0  ;;  %v5603_v3 = vld [vmem:[%s6565_s4 + $0x30] sm:$0xff]   ;;  %v5618_v5 = vld [vmem:[%s6565_s4 + $0x28] sm:$0xff]   ;;  %vm994_vm2 = vsmask.f32 7424  ;;  %vm5453_vm4 = vmmov 0  }
  0x1a   : > { %4778 = vmatprep.subr.bf16.mxu1 %v5589_v1  ;;  %4767 = vmatpush3.bf16.msra.mxu0 %v5583_v0  ;;  %s5612_s18 = sshll.u32 %s506_s21, 4  ;;  %v5629_v6 = vld [vmem:[%s6565_s4] sm:$0xff]   ;;  %v5660_v11 = vld [vmem:[%s6565_s4 + $0x58] sm:$0xff]   ;;  %v5678_v15 = vld [vmem:[%s6565_s4 + $0x50] sm:$0xff]   ;;  %vm1293_vm3 = vsmask.f32 5376 }
  0x1b   : > { %4779 = vmatpush3.bf16.msra.mxu1 %v5589_v1  ;;  %4768 = vmatprep.subr.bf16.mxu0 %v5595_v2  ;;  %s5624_s15 = scalar_lea.vmem %s6587_s0, %s5612_s18  ;;  %s514_s24 = scalar_lea.vmem %s6562_s1, %s5612_s18  ;;  %v5639_v7 = vld [vmem:[%s6565_s4 + $0x20] sm:$0xff]   ;;  %v5666_v12 = vld [vmem:[%s6565_s4 + $0x78] sm:$0xff]   ;;  %v5688_v16 = vld [vmem:[%s6565_s4 + $0x70] sm:$0xff]   ;;  %vm1674_vm5 = vcmask 261120   ;;  %vm4047_vm6 = vcmask 1040384  }
  0x1c   : > { %4780 = vmatprep.subr.bf16.mxu1 %v5603_v3  ;;  %v5644_v8 = vld [vmem:[%s5624_s15] sm:$0xff]   ;;  %v528_v10 = vld [vmem:[%s5624_s15 + $0x8] sm:$0xf]  ;;  %s519_s19 = scalar_lea.vmem %s6563_s2, %s5612_s18  ;;  %s5694_s0 = scalar_lea.vmem %s6564_s3, %s5612_s18  ;;  %v529_v30 = vld [vmem:[%s5624_s15 + $0xc] sm:$0x1] }
  0x1d   : > { %v5647_v9 = vld [vmem:[%s514_s24] sm:$0xff]   ;;  %4774 = vmatprep.mubr.msk.bf16.mxu0 %vm580_vm0, %v5644_v8  ;;  %v5668_v13 = vcombine.low %v528_v10, %v528_v10  ;;  %v5671_v14 = vld [vmem:[%s514_s24 + $0x8] ss:$0 sps:$4 sm:$0xff]   ;;  %v997_v18 = vshll.u32 %v5644_v8, 16  ;;  %v995_v24 = vshrl.u32 %v5644_v8, 16  ;;  %v4255_v37 = vcombine.low %v528_v10, %v529_v30  ;;  %s503_s24 = sand.u32 1, %s5442_s30   ;;  %s4071_s18 = scalar_lea.hbm %s6575_s14, %s4526_s27 }
  0x1e   : > { %4769 = vmatpush3.bf16.msra.mxu0 %v5595_v2  ;;  %4786 = vmatprep.mubr.msk.bf16.mxu1 %vm580_vm0, %v5647_v9  ;;  %v5701_v17 = vld [vmem:[%s6565_s4 + $0x48] sm:$0xff]   ;;  %v5712_v20 = vld [vmem:[%s519_s19] sm:$0xff]   ;;  %v1358_v36 = vshrl.u32 %v5647_v9, 16  ;;  %v1361_v39 = vshll.u32 %v5647_v9, 16  ;;  %v1592_v40 = vrot.slane %v5644_v8, 3  ;;  %v1365_v41 = vshrl.u32 %v5671_v14, 16 }
  0x1f   : > { %4781 = vmatpush3.bf16.msra.mxu1 %v5603_v3  ;;  %4770 = vmatprep.subr.bf16.mxu0 %v5610_v4  ;;  %v5710_v19 = vld [vmem:[%s6565_s4 + $0x68] sm:$0xff]   ;;  %v1001_v21 = vshll.u32 %v5668_v13, 16  ;;  %v5718_v22 = vld [vmem:[%s5694_s0] sm:$0xff]   ;;  %v1118_v25 = vshll.u32 %v5712_v20, 16  ;;  %v999_v26 = vrot.slane %v997_v18, 1  ;;  %v1005_v28 = vshrl.u32 %v5668_v13, 16 }
  0x20   : > { %4782 = vmatprep.subr.bf16.mxu1 %v5618_v5  ;;  %v5723_v23 = vld [vmem:[%s519_s19 + $0x8] ss:$0 sps:$4 sm:$0xff]   ;;  %v5742_v31 = vld [vmem:[%s6565_s4 + $0x40] sm:$0xff]   ;;  %v1116_v33 = vshrl.u32 %v5712_v20, 16  ;;  %v1368_v42 = vshll.u32 %v5671_v14, 16  ;;  %v5758_v43 = vrot.slane %v4255_v37, 3 }
  0x21   : > { %v1003_v27 = vrot.slane %v1001_v21, 1  ;;  %v1122_v29 = vshll.u32 %v5723_v23, 16  ;;  %v5747_v32 = vld [vmem:[%s6565_s4 + $0x60] sm:$0xff]   ;;  %v1120_v34 = vrot.slane %v1118_v25, 1  ;;  %v1126_v35 = vshrl.u32 %v5723_v23, 16  ;;  %s504_s21 = scalar_lea.vmem [#allocation2], %s503_s24 }
  0x22   : > { %4771 = vmatpush3.bf16.msra.mxu0 %v5610_v4  ;;  %v5764_v44 = vld [vmem:[%s5694_s0 + $0x8] ss:$0 sps:$4 sm:$0xff]   ;;  %v5768_v45 = vsel %vm1591_vm1, %v1592_v40, %v5758_v43  ;;  %v1000_v46 = vor.u32 %v999_v26, %v995_v24  ;;  %v1294_v52 = vrot.slane %v995_v24, 2  ;;  %v1295_v53 = vrot.slane %v997_v18, 3  ;;  %s4073_s28 = sshll.u32 %s504_s21, 4  ;;  %s4061_s19 = scalar_lea.sflag [#allocation3], %s503_s24  ;;  %s4074_s28 = int_to_ptr.vmem [resolvable:$true] %s4073_s28 }
  0x23   : > { %4783 = vmatpush3.bf16.msra.mxu1 %v5618_v5  ;;  %4772 = vmatprep.subr.bf16.mxu0 %v5629_v6  ;;  %v1124_v38 = vrot.slane %v1122_v29, 1  ;;  %v1007_v48 = vor.u32 %v1005_v28, %v1003_v27  ;;  %v1121_v49 = vor.u32 %v1120_v34, %v1116_v33  ;;  %v1297_v54 = vrot.slane %v1005_v28, 2  ;;  %s5390_s25 = scalar_lea.vmem %s4074_s28, 16  ;;  %s5394_s0 = sshll.u32 %s5456_s26, 4  ;;  %s5395_s0 = int_to_ptr.vmem [resolvable:$false] %s5394_s0 }
  0x24   : > { %4784 = vmatprep.subr.bf16.mxu1 %v5639_v7  ;;  %v1004_v47 = vsel %vm994_vm2, %v1000_v46, %v1003_v27  ;;  %v1298_v55 = vrot.slane %v1001_v21, 3  ;;  %v1360_v56 = vrot.slane %v1358_v36, 2  ;;  %v1363_v57 = vrot.slane %v1361_v39, 3  ;;  %p5391_p11 = scmp.ne.s32.totalorder %s4074_s28, %s5390_s25  ;;  %s5396_s17 = scalar_lea.vmem %s5395_s0, 32 }
  0x25   : > { %v5807_v50 = vsel %vm994_vm2, %v1121_v49, %v1124_v38  ;;  %v5825_v51 = vor.u32 %v1126_v35, %v1124_v38  ;;  %v1367_v58 = vrot.slane %v1365_v41, 2  ;;  %v1370_v59 = vrot.slane %v1368_v42, 3  ;;  %v5266_v42 = vld [vmem:[%s6567_s6 + $0x18] sm:$0xff]   ;;  %p5397_p0 = scmp.lt.s32.totalorder %s4074_s28, %s5395_s0  ;;  %p5398_p1 = scmp.lt.s32.totalorder %s5396_s17, %s5390_s25 }
  0x26   : > { %4773 = vmatpush3.bf16.msra.mxu0 %v5629_v6  ;;  %v1296_v60 = vor.u32 %v1295_v53, %v1294_v52  ;;  %v1299_v61 = vor.u32 %v1298_v55, %v1297_v54  ;;  %v1364_v62 = vor.u32 %v1363_v57, %v1360_v56  ;;  %p5392_p12 = pnand %p5391_p11, %p5570_p5 }
  0x27   : > { %4785 = vmatpush3.bf16.msra.mxu1 %v5639_v7  ;;  %4790 = vmatprep.subr.bf16.mxu0 %v5660_v11  ;;  %v5867_v63 = vor.u32 %v1370_v59, %v1367_v58  ;;  %v5270_v58 = vld [vmem:[%s6567_s6 + $0x48] sm:$0xff]   ;;  %p5399_p2 = por %p5398_p1, %p5397_p0 }
  0x28   : > { %4802 = vmatprep.subr.bf16.mxu1 %v5666_v12  ;;  %v1300_v8 = vsel %vm1293_vm3, %v1296_v60, %v1299_v61  ;;  %p5393_p13 = pneg %p5392_p12 }
  0x29   : > { %4775 = vmatmul.mubr.msk.bf16.vlgmr.msra.gmra.mxu0 %vm580_vm0, %v5668_v13 }
  0x2a   : > { %4787 = vmatmul.mubr.msk.bf16.vlgmr.msra.gmra.mxu1 %vm580_vm0, %v5671_v14  ;;  %4791 = vmatpush3.bf16.msra.mxu0 %v5660_v11  ;;  %p5400_p3 = pnand %p5399_p2, %p5393_p13 }
  0x2b   : > { %4803 = vmatpush3.bf16.msra.mxu1 %v5666_v12  ;;  %4792 = vmatprep.subr.bf16.mxu0 %v5678_v15 }
  0x2c   : > { %4804 = vmatprep.subr.bf16.mxu1 %v5688_v16  ;;  %4798 = vmatprep.mubr.msk.bf16.mxu0 %vm580_vm0, %v5712_v20 }
  0x2d   : > { %4810 = vmatprep.mubr.msk.bf16.mxu1 %vm580_vm0, %v5718_v22 }
  0x2e   : > { %4793 = vmatpush3.bf16.msra.mxu0 %v5678_v15 }
  0x2f   : > { %4805 = vmatpush3.bf16.msra.mxu1 %v5688_v16  ;;  %4794 = vmatprep.subr.bf16.mxu0 %v5701_v17 }
  0x30   : > { %4806 = vmatprep.subr.bf16.mxu1 %v5710_v19 }
  0x32   : > { %4795 = vmatpush3.bf16.msra.mxu0 %v5701_v17 }
  0x33   : > { %4807 = vmatpush3.bf16.msra.mxu1 %v5710_v19  ;;  %4796 = vmatprep.subr.bf16.mxu0 %v5742_v31 }
  0x34   : > { %4808 = vmatprep.subr.bf16.mxu1 %v5747_v32 }
  0x36   : > { %4797 = vmatpush3.bf16.msra.mxu0 %v5742_v31 }
  0x37   : > { %4809 = vmatpush3.bf16.msra.mxu1 %v5747_v32  ;;  %4814 = vmatprep.subr.bf16.mxu0 %v5583_v0 }
  0x38   : > { %4826 = vmatprep.subr.bf16.mxu1 %v5589_v1 }
  0x39   : > { %4799 = vmatmul.mubr.msk.bf16.vlgmr.msra.gmra.mxu0 %vm580_vm0, %v5723_v23 }
  0x3a   : > { %4811 = vmatmul.mubr.msk.bf16.vlgmr.msra.gmra.mxu1 %vm580_vm0, %v5764_v44  ;;  %4815 = vmatpush3.bf16.msra.mxu0 %v5583_v0 }
  0x3b   : > { %4827 = vmatpush3.bf16.msra.mxu1 %v5589_v1  ;;  %4816 = vmatprep.subr.bf16.mxu0 %v5595_v2 }
  0x3c   : > { %4828 = vmatprep.subr.bf16.mxu1 %v5603_v3  ;;  %4822 = vmatprep.mubr.msk.bf16.mxu0 %vm580_vm0, %v5647_v9  ;;  %v1372_v9 = vsel %vm1293_vm3, %v1364_v62, %v5867_v63 }
  0x3d   : > { %4834 = vmatprep.mubr.msk.bf16.mxu1 %vm580_vm0, %v1004_v47 }
  0x3e   : > { %4817 = vmatpush3.bf16.msra.mxu0 %v5595_v2 }
  0x3f   : > { %4829 = vmatpush3.bf16.msra.mxu1 %v5603_v3  ;;  %4818 = vmatprep.subr.bf16.mxu0 %v5610_v4 }
  0x40   : > { %4830 = vmatprep.subr.bf16.mxu1 %v5618_v5 }
  0x42   : > { %4819 = vmatpush3.bf16.msra.mxu0 %v5610_v4 }
  0x43   : > { %4831 = vmatpush3.bf16.msra.mxu1 %v5618_v5  ;;  %4820 = vmatprep.subr.bf16.mxu0 %v5629_v6 }
  0x44   : > { %4832 = vmatprep.subr.bf16.mxu1 %v5639_v7 }
  0x46   : > { %4821 = vmatpush3.bf16.msra.mxu0 %v5629_v6 }
  0x47   : > { %4833 = vmatpush3.bf16.msra.mxu1 %v5639_v7  ;;  %4838 = vmatprep.subr.bf16.mxu0 %v5660_v11 }
  0x48   : > { %4850 = vmatprep.subr.bf16.mxu1 %v5666_v12 }
  0x49   : > { %4823 = vmatmul.mubr.msk.bf16.vlgmr.msra.gmra.mxu0 %vm580_vm0, %v5671_v14 }
  0x4a   : > { %4835 = vmatmul.mubr.msk.bf16.vlgmr.msra.gmra.mxu1 %vm580_vm0, %v1007_v48  ;;  %4839 = vmatpush3.bf16.msra.mxu0 %v5660_v11 }
  0x4b   : > { %4851 = vmatpush3.bf16.msra.mxu1 %v5666_v12  ;;  %4840 = vmatprep.subr.bf16.mxu0 %v5678_v15 }
  0x4c   : > { %4852 = vmatprep.subr.bf16.mxu1 %v5688_v16  ;;  %4846 = vmatprep.mubr.msk.bf16.mxu0 %vm580_vm0, %v5718_v22 }
  0x4d   : > { %4858 = vmatprep.mubr.msk.bf16.mxu1 %vm580_vm0, %v5807_v50 }
  0x4e   : > { %4841 = vmatpush3.bf16.msra.mxu0 %v5678_v15 }
  0x4f   : > { %4853 = vmatpush3.bf16.msra.mxu1 %v5688_v16  ;;  %4842 = vmatprep.subr.bf16.mxu0 %v5701_v17 }
  0x50   : > { %4854 = vmatprep.subr.bf16.mxu1 %v5710_v19 }
  0x52   : > { %4843 = vmatpush3.bf16.msra.mxu0 %v5701_v17 }
  0x53   : > { %4855 = vmatpush3.bf16.msra.mxu1 %v5710_v19  ;;  %4844 = vmatprep.subr.bf16.mxu0 %v5742_v31 }
  0x54   : > { %4856 = vmatprep.subr.bf16.mxu1 %v5747_v32 }
  0x56   : > { %4845 = vmatpush3.bf16.msra.mxu0 %v5742_v31 }
  0x57   : > { %4857 = vmatpush3.bf16.msra.mxu1 %v5747_v32  ;;  %4862 = vmatprep.subr.bf16.mxu0 %v5583_v0 }
  0x58   : > { %4874 = vmatprep.subr.bf16.mxu1 %v5589_v1 }
  0x59   : > { %4847 = vmatmul.mubr.msk.bf16.vlgmr.msra.gmra.mxu0 %vm580_vm0, %v5764_v44 }
  0x5a   : > { %4859 = vmatmul.mubr.msk.bf16.vlgmr.msra.gmra.mxu1 %vm580_vm0, %v5825_v51  ;;  %4863 = vmatpush3.bf16.msra.mxu0 %v5583_v0 }
  0x5b   : > { %4875 = vmatpush3.bf16.msra.mxu1 %v5589_v1  ;;  %4864 = vmatprep.subr.bf16.mxu0 %v5595_v2 }
  0x5c   : > { %4876 = vmatprep.subr.bf16.mxu1 %v5603_v3  ;;  %4870 = vmatprep.mubr.msk.bf16.mxu0 %vm580_vm0, %v5712_v20 }
  0x5d   : > { %4882 = vmatprep.mubr.msk.bf16.mxu1 %vm580_vm0, %v5718_v22 }
  0x5e   : > { %4865 = vmatpush3.bf16.msra.mxu0 %v5595_v2 }
  0x5f   : > { %4877 = vmatpush3.bf16.msra.mxu1 %v5603_v3  ;;  %4866 = vmatprep.subr.bf16.mxu0 %v5610_v4 }
  0x60   : > { %4878 = vmatprep.subr.bf16.mxu1 %v5618_v5 }
  0x62   : > { %4867 = vmatpush3.bf16.msra.mxu0 %v5610_v4 }
  0x63   : > { %4879 = vmatpush3.bf16.msra.mxu1 %v5618_v5  ;;  %4868 = vmatprep.subr.bf16.mxu0 %v5629_v6 }
  0x64   : > { %4880 = vmatprep.subr.bf16.mxu1 %v5639_v7 }
  0x66   : > { %4869 = vmatpush3.bf16.msra.mxu0 %v5629_v6 }
  0x67   : > { %4881 = vmatpush3.bf16.msra.mxu1 %v5639_v7  ;;  %4886 = vmatprep.subr.bf16.mxu0 %v5660_v11 }
  0x68   : > { %4898 = vmatprep.subr.bf16.mxu1 %v5666_v12 }
  0x69   : > { %4871 = vmatmul.mubr.msk.bf16.vlgmr.msra.gmra.mxu0 %vm580_vm0, %v5723_v23 }
  0x6a   : > { %4883 = vmatmul.mubr.msk.bf16.vlgmr.msra.gmra.mxu1 %vm580_vm0, %v5764_v44  ;;  %4887 = vmatpush3.bf16.msra.mxu0 %v5660_v11 }
  0x6b   : > { %4899 = vmatpush3.bf16.msra.mxu1 %v5666_v12  ;;  %4888 = vmatprep.subr.bf16.mxu0 %v5678_v15 }
  0x6c   : > { %4900 = vmatprep.subr.bf16.mxu1 %v5688_v16  ;;  %4894 = vmatprep.mubr.msk.bf16.mxu0 %vm580_vm0, %v1300_v8 }
  0x6d   : > { %4906 = vmatprep.mubr.msk.bf16.mxu1 %vm580_vm0, %v1372_v9 }
  0x6e   : > { %4889 = vmatpush3.bf16.msra.mxu0 %v5678_v15 }
  0x6f   : > { %4901 = vmatpush3.bf16.msra.mxu1 %v5688_v16  ;;  %4890 = vmatprep.subr.bf16.mxu0 %v5701_v17 }
  0x70   : > { %4902 = vmatprep.subr.bf16.mxu1 %v5710_v19 }
  0x72   : > { %4891 = vmatpush3.bf16.msra.mxu0 %v5701_v17 }
  0x73   : > { %4903 = vmatpush3.bf16.msra.mxu1 %v5710_v19  ;;  %4892 = vmatprep.subr.bf16.mxu0 %v5742_v31 }
  0x74   : > { %4904 = vmatprep.subr.bf16.mxu1 %v5747_v32 }
  0x76   : > { %4893 = vmatpush3.bf16.msra.mxu0 %v5742_v31 }
  0x77   : > { %4905 = vmatpush3.bf16.msra.mxu1 %v5747_v32  ;;  %4910 = vmatprep.subr.bf16.mxu0 %v5583_v0 }
  0x78   : > { %4922 = vmatprep.subr.bf16.mxu1 %v5589_v1 }
  0x79   : > { %4895 = vmatmul.mubr.msk.bf16.vlgmr.msra.gmra.mxu0 %vm580_vm0, %v1299_v61 }
  0x7a   : > { %4907 = vmatmul.mubr.msk.bf16.vlgmr.msra.gmra.mxu1 %vm580_vm0, %v5867_v63  ;;  %4911 = vmatpush3.bf16.msra.mxu0 %v5583_v0  ;;  %v5264_v0 = vld [vmem:[%s6567_s6 + $0x28] sm:$0xff]  }
  0x7b   : > { %4923 = vmatpush3.bf16.msra.mxu1 %v5589_v1  ;;  %4912 = vmatprep.subr.bf16.mxu0 %v5595_v2  ;;  %v5262_v1 = vld [vmem:[%s6567_s6 + $0x8] sm:$0xff]  }
  0x7c   : > { %4924 = vmatprep.subr.bf16.mxu1 %v5603_v3  ;;  %4918 = vmatprep.mubr.msk.bf16.mxu0 %vm580_vm0, %v5718_v22 }
  0x7d   : > { %4930 = vmatprep.mubr.msk.bf16.mxu1 %vm580_vm0, %v5807_v50 }
  0x7e   : > { %4913 = vmatpush3.bf16.msra.mxu0 %v5595_v2  ;;  %v5452_v2 = vmov 0.0  }
  0x7f   : > { %4925 = vmatpush3.bf16.msra.mxu1 %v5603_v3  ;;  %4914 = vmatprep.subr.bf16.mxu0 %v5610_v4  ;;  %v5265_v3 = vld [vmem:[%s6567_s6 + $0x20] sm:$0xff]  }
  0x80   : > { %4926 = vmatprep.subr.bf16.mxu1 %v5618_v5 }
  0x82   : > { %4915 = vmatpush3.bf16.msra.mxu0 %v5610_v4  ;;  %v5263_v4 = vld [vmem:[%s6567_s6] sm:$0xff]  }
  0x83   : > { %4927 = vmatpush3.bf16.msra.mxu1 %v5618_v5  ;;  %4916 = vmatprep.subr.bf16.mxu0 %v5629_v6  ;;  %v5970_v5 = vld [vmem:[%s6566_s5] ss:$0 sm:$0xff] }
  0x84   : > { %4928 = vmatprep.subr.bf16.mxu1 %v5639_v7 }
  0x86   : > { %4917 = vmatpush3.bf16.msra.mxu0 %v5629_v6 }
  0x87   : > { %4929 = vmatpush3.bf16.msra.mxu1 %v5639_v7  ;;  %4934 = vmatprep.subr.bf16.mxu0 %v5660_v11 }
  0x88   : > { %4946 = vmatprep.subr.bf16.mxu1 %v5666_v12 }
  0x89   : > { %4919 = vmatmul.mubr.msk.bf16.vlgmr.msra.gmra.mxu0 %vm580_vm0, %v5764_v44 }
  0x8a   : > { %4931 = vmatmul.mubr.msk.bf16.vlgmr.msra.gmra.mxu1 %vm580_vm0, %v5825_v51  ;;  %4935 = vmatpush3.bf16.msra.mxu0 %v5660_v11  ;;  %v5267_v51 = vld [vmem:[%s6567_s6 + $0x10] sm:$0xff]  }
  0x8b   : > { %4947 = vmatpush3.bf16.msra.mxu1 %v5666_v12  ;;  %4936 = vmatprep.subr.bf16.mxu0 %v5678_v15 }
  0x8c   : > { %4948 = vmatprep.subr.bf16.mxu1 %v5688_v16  ;;  %4942 = vmatprep.mubr.msk.bf16.mxu0 %vm580_vm0, %v1372_v9 }
  0x8d   : > { %4954 = vmatprep.mubr.msk.bf16.mxu1 %vm580_vm0, %v5768_v45 }
  0x8e   : > { %4937 = vmatpush3.bf16.msra.mxu0 %v5678_v15 }
  0x8f   : > { %4949 = vmatpush3.bf16.msra.mxu1 %v5688_v16  ;;  %4938 = vmatprep.subr.bf16.mxu0 %v5701_v17 }
  0x90   : > { %4950 = vmatprep.subr.bf16.mxu1 %v5710_v19 }
  0x92   : > { %4939 = vmatpush3.bf16.msra.mxu0 %v5701_v17 }
  0x93   : > { %4951 = vmatpush3.bf16.msra.mxu1 %v5710_v19  ;;  %4940 = vmatprep.subr.bf16.mxu0 %v5742_v31 }
  0x94   : > { %4952 = vmatprep.subr.bf16.mxu1 %v5747_v32 }
  0x96   : > { %4941 = vmatpush3.bf16.msra.mxu0 %v5742_v31 }
  0x97   : > { %4953 = vmatpush3.bf16.msra.mxu1 %v5747_v32  ;;  %4974 = vmatprep.subr.bf16.mxu0 %v5452_v2 }
  0x98   : > { %4958 = vmatprep.subr.bf16.mxu1 %v5452_v2 }
  0x99   : > { %4943 = vmatmul.mubr.msk.bf16.vlgmr.msra.gmra.mxu0 %vm580_vm0, %v5867_v63 }
  0x9a   : > { %4955 = vmatmul.mubr.msk.bf16.vlgmr.msra.gmra.mxu1 %vm580_vm0, %v5758_v43  ;;  %4975 = vmatpush3.bf16.msra.mxu0 %v5264_v0 }
  0x9b   : > { %4959 = vmatpush3.bf16.msra.mxu1 %v5262_v1  ;;  %4962 = vmatprep.mubr.msk.bf16.mxu1 %vm5453_vm4, %v5452_v2 }
  0x9c   : > { %4960 = vmatprep.subr.bf16.mxu1 %v5452_v2  ;;  %4976 = vmatprep.subr.bf16.mxu0 %v5452_v2 }
  0x9d   : > { %4978 = vmatprep.mubr.msk.bf16.mxu0 %vm5453_vm4, %v5452_v2 }
  0x9e   : > { %4977 = vmatpush3.bf16.msra.mxu0 %v5265_v3  ;;  %v5271_v3 = vld [vmem:[%s6567_s6 + $0x40] sm:$0xff]  }
  0x9f   : > { %4961 = vmatpush3.bf16.msra.mxu1 %v5263_v4  ;;  %4990 = vmatprep.subr.bf16.mxu0 %v5452_v2 }
  0xa0   : > { %4966 = vmatprep.subr.bf16.mxu1 %v5452_v2 }
  0xe9   : > { %v4776_v6 = vpop.f32.mrf.mxu0 }
  0xea   : > { %v643_v7 = vadd.f32 %v4776_v6, %v5970_v5  ;;  %v4788_v10 = vpop.f32.mrf.mxu1 }
  0xeb   : > { %v621_v11 = vpop.f32.mrf.mxu0 }
  0xec   : > { %v741_v12 = vadd.f32 %v4788_v10, %v643_v7  ;;  %v725_v13 = vpop.f32.mrf.mxu1  ;;  %v641_v16 = vadd.f32 %v5970_v5, %v621_v11 }
  0xed   : > { %v4777_v14 = vpop.f32.mrf.mxu0 }
  0xee   : > { %v4789_v15 = vpop.f32.mrf.mxu1  ;;  %v739_v20 = vadd.f32 %v725_v13, %v641_v16 }
  0xef   : > { %v624_v17 = vpop.f32.mrf.mxu0 }
  0xf0   : > { %v728_v18 = vpop.f32.mrf.mxu1  ;;  %v642_v21 = vadd.f32 %v5970_v5, %v624_v17 }
  0xf2   : > { %v740_v29 = vadd.f32 %v728_v18, %v642_v21 }
  0xf9   : > { %v4800_v19 = vpop.f32.mrf.mxu0 }
  0xfa   : > { %v839_v22 = vadd.f32 %v4800_v19, %v741_v12  ;;  %v4812_v23 = vpop.f32.mrf.mxu1 }
  0xfb   : > { %v823_v24 = vpop.f32.mrf.mxu0 }
  0xfc   : > { %v937_v25 = vadd.f32 %v4812_v23, %v839_v22  ;;  %v837_v26 = vadd.f32 %v823_v24, %v739_v20  ;;  %v921_v27 = vpop.f32.mrf.mxu1 }
  0xfd   : > { %v4801_v28 = vpop.f32.mrf.mxu0 }
  0xfe   : > { %v940_v30 = vmax.f32 %v937_v25, 0.0  ;;  %v4813_v31 = vpop.f32.mrf.mxu1  ;;  %v935_v34 = vadd.f32 %v921_v27, %v837_v26 }
  0xff   : > { %v826_v32 = vpop.f32.mrf.mxu0 }
 0x100   : > { %v942_v33 = vpack.c.bf16 %v940_v30, %v940_v30  ;;  %v838_v35 = vadd.f32 %v826_v32, %v740_v29  ;;  %v924_v36 = vpop.f32.mrf.mxu1  ;;  %v938_v40 = vmax.f32 %v935_v34, 0.0 }
 0x102   : > { %v936_v37 = vadd.f32 %v924_v36, %v838_v35  ;;  %v2201_v38 = vshrl.u32 %v942_v33, 16  ;;  %v2204_v39 = vshll.u32 %v942_v33, 16  ;;  %v2350_v49 = vrot.slane %v942_v33, 3  ;;  %v5268_v33 = vld [vmem:[%s6567_s6 + $0x38] sm:$0xff]  }
 0x104   : > { %v939_v41 = vmax.f32 %v936_v37, 0.0  ;;  %v2203_v44 = vrot.slane %v2201_v38, 2  ;;  %v2206_v45 = vrot.slane %v2204_v39, 3 }
 0x106   : > { %v941_v43 = vpack.c.bf16 %v939_v41, %v938_v40  ;;  %v2207_v60 = vor.u32 %v2206_v45, %v2203_v44 }
 0x108   : > { %v1795_v46 = vshrl.u32 %v941_v43, 16  ;;  %v1797_v47 = vshll.u32 %v941_v43, 16  ;;  %4963 = vmatmul.mubr.msk.bf16.vlgmr.msra.gmra.mxu1 %vm1674_vm5, %v941_v43  ;;  %v2349_v48 = vrot.slane %v941_v43, 3 }
 0x109   : > { %v4824_v50 = vpop.f32.mrf.mxu0  ;;  %4967 = vmatpush3.bf16.msra.mxu1 %v5266_v42  ;;  %4970 = vmatprep.mubr.msk.bf16.mxu1 %vm5453_vm4, %v5452_v2  ;;  %v5269_v42 = vld [vmem:[%s6567_s6 + $0x30] sm:$0xff]  }
 0x10a   : > { %v1799_v52 = vrot.slane %v1797_v47, 1  ;;  %v993_v53 = vadd.f32 %v4824_v50, %v5970_v5  ;;  %v4836_v54 = vpop.f32.mrf.mxu1  ;;  %4968 = vmatprep.subr.bf16.mxu1 %v5452_v2  ;;  %v2197_v55 = vrot.slane %v1795_v46, 2  ;;  %v2198_v56 = vrot.slane %v1797_v47, 3 }
 0x10b   : > { %v977_v57 = vpop.f32.mrf.mxu0  ;;  %v5990_v59 = vsel %vm1591_vm1, %v2349_v48, %v2350_v49 }
 0x10c   : > { %v1064_v61 = vadd.f32 %v4836_v54, %v993_v53  ;;  %v1048_v62 = vpop.f32.mrf.mxu1  ;;  %v1800_v63 = vor.u32 %v1799_v52, %v1795_v46  ;;  %v2199_v8 = vor.u32 %v2198_v56, %v2197_v55  ;;  %v991_v4 = vadd.f32 %v5970_v5, %v977_v57  ;;  %v5278_v53 = vld [vmem:[%s6567_s6 + $0x58] sm:$0xff]   ;;  %v5280_v57 = vld [vmem:[%s6567_s6 + $0x50] sm:$0xff]  }
 0x10d   : > { %v4825_v9 = vpop.f32.mrf.mxu0  ;;  %4969 = vmatpush3.bf16.msra.mxu1 %v5267_v51 }
 0x10e   : > { %v4837_v0 = vpop.f32.mrf.mxu1  ;;  %4979 = vmatmul.mubr.msk.bf16.vlgmr.msra.gmra.mxu0 %vm1674_vm5, %v1800_v63  ;;  %4982 = vmatprep.subr.bf16.mxu1 %v5452_v2  ;;  %v5995_v1 = vsel %vm1293_vm3, %v2199_v8, %v2207_v60  ;;  %v1062_v11 = vadd.f32 %v1048_v62, %v991_v4 }
 0x10f   : > { %4991 = vmatpush3.bf16.msra.mxu0 %v5270_v58  ;;  %4994 = vmatprep.mubr.msk.bf16.mxu0 %vm5453_vm4, %v5452_v2  ;;  %v980_v6 = vpop.f32.mrf.mxu0 }
 0x110   : > { %4992 = vmatprep.subr.bf16.mxu0 %v5452_v2  ;;  %v1051_v7 = vpop.f32.mrf.mxu1  ;;  %v992_v12 = vadd.f32 %v5970_v5, %v980_v6 }
 0x112   : > { %v1063_v20 = vadd.f32 %v1051_v7, %v992_v12 }
 0x113   : > { %4993 = vmatpush3.bf16.msra.mxu0 %v5271_v3 }
 0x114   : > { %5006 = vmatprep.subr.bf16.mxu0 %v5452_v2 }
 0x119   : > { %v4848_v10 = vpop.f32.mrf.mxu0 }
 0x11a   : > { %v1115_v13 = vadd.f32 %v4848_v10, %v1064_v61  ;;  %v4860_v14 = vpop.f32.mrf.mxu1 }
 0x11b   : > { %v1099_v15 = vpop.f32.mrf.mxu0 }
 0x11c   : > { %v1185_v16 = vadd.f32 %v4860_v14, %v1115_v13  ;;  %v1113_v17 = vadd.f32 %v1099_v15, %v1062_v11  ;;  %v1169_v18 = vpop.f32.mrf.mxu1 }
 0x11d   : > { %v4849_v19 = vpop.f32.mrf.mxu0 }
 0x11e   : > { %v1188_v21 = vmax.f32 %v1185_v16, 0.0  ;;  %v4861_v22 = vpop.f32.mrf.mxu1  ;;  %v1183_v25 = vadd.f32 %v1169_v18, %v1113_v17  ;;  %v5272_v18 = vld [vmem:[%s6567_s6 + $0x68] sm:$0xff]  }
 0x11f   : > { %v1102_v23 = vpop.f32.mrf.mxu0 }
 0x120   : > { %v1190_v24 = vpack.c.bf16 %v1188_v21, %v1188_v21  ;;  %v1114_v26 = vadd.f32 %v1102_v23, %v1063_v20  ;;  %v1172_v27 = vpop.f32.mrf.mxu1  ;;  %v1186_v31 = vmax.f32 %v1183_v25, 0.0  ;;  %v5273_v23 = vld [vmem:[%s6567_s6 + $0x60] sm:$0xff]  }
 0x122   : > { %v1184_v28 = vadd.f32 %v1172_v27, %v1114_v26  ;;  %v2276_v29 = vshrl.u32 %v1190_v24, 16  ;;  %v2279_v30 = vshll.u32 %v1190_v24, 16  ;;  %v2418_v40 = vrot.slane %v1190_v24, 3 }
 0x124   : > { %v1187_v32 = vmax.f32 %v1184_v28, 0.0  ;;  %v2278_v35 = vrot.slane %v2276_v29, 2  ;;  %v2281_v36 = vrot.slane %v2279_v30, 3 }
 0x126   : > { %v1189_v34 = vpack.c.bf16 %v1187_v32, %v1186_v31  ;;  %v2282_v49 = vor.u32 %v2281_v36, %v2278_v35  ;;  %v5274_v32 = vld [vmem:[%s6567_s6 + $0x88] sm:$0xff]   ;;  %v5275_v36 = vld [vmem:[%s6567_s6 + $0x80] sm:$0xff]  }
 0x128   : > { %v1864_v37 = vshrl.u32 %v1189_v34, 16  ;;  %v1866_v38 = vshll.u32 %v1189_v34, 16  ;;  %4971 = vmatmul.mubr.msk.bf16.vlgmr.msra.gmra.mxu1 %vm1674_vm5, %v1189_v34  ;;  %v2417_v39 = vrot.slane %v1189_v34, 3 }
 0x129   : > { %v4872_v41 = vpop.f32.mrf.mxu0  ;;  %4983 = vmatpush3.bf16.msra.mxu1 %v5268_v33  ;;  %4986 = vmatprep.mubr.msk.bf16.mxu1 %vm5453_vm4, %v5452_v2 }
 0x12a   : > { %v1868_v43 = vrot.slane %v1866_v38, 1  ;;  %v4884_v44 = vpop.f32.mrf.mxu1  ;;  %4984 = vmatprep.subr.bf16.mxu1 %v5452_v2  ;;  %v2272_v45 = vrot.slane %v1864_v37, 2  ;;  %v2273_v46 = vrot.slane %v1866_v38, 3  ;;  %v6017_v48 = vsel %vm1591_vm1, %v2417_v39, %v2418_v40  ;;  %v5276_v38 = vld [vmem:[%s6567_s6 + $0xa8] sm:$0xff]  }
 0x12b   : > { %v1225_v47 = vpop.f32.mrf.mxu0  ;;  %v1241_v20 = vadd.f32 %v4872_v41, %v5970_v5 }
 0x12c   : > { %v1276_v50 = vpop.f32.mrf.mxu1  ;;  %v2274_v51 = vor.u32 %v2273_v46, %v2272_v45  ;;  %v1869_v55 = vor.u32 %v1868_v43, %v1864_v37  ;;  %v1239_v58 = vadd.f32 %v5970_v5, %v1225_v47 }
 0x12d   : > { %v4873_v52 = vpop.f32.mrf.mxu0  ;;  %4985 = vmatpush3.bf16.msra.mxu1 %v5269_v42  ;;  %v1292_v26 = vadd.f32 %v4884_v44, %v1241_v20  ;;  %v5277_v44 = vld [vmem:[%s6567_s6 + $0xa0] sm:$0xff]  }
 0x12e   : > { %v4885_v54 = vpop.f32.mrf.mxu1  ;;  %4998 = vmatprep.subr.bf16.mxu1 %v5452_v2  ;;  %v6024_v56 = vsel %vm1293_vm3, %v2274_v51, %v2282_v49  ;;  %v1290_v63 = vadd.f32 %v1276_v50, %v1239_v58 }
 0x12f   : > { %v1228_v60 = vpop.f32.mrf.mxu0  ;;  %v5279_v54 = vld [vmem:[%s6567_s6 + $0xc8] sm:$0xff]  }
 0x130   : > { %4987 = vmatmul.mubr.msk.bf16.vlgmr.msra.gmra.mxu1 %vm1674_vm5, %v1869_v55  ;;  %v1279_v61 = vpop.f32.mrf.mxu1  ;;  %v1240_v8 = vadd.f32 %v5970_v5, %v1228_v60 }
 0x131   : > { %4999 = vmatpush3.bf16.msra.mxu1 %v5278_v53  ;;  %5002 = vmatprep.mubr.msk.bf16.mxu1 %vm5453_vm4, %v5452_v2 }
 0x132   : > { %5000 = vmatprep.subr.bf16.mxu1 %v5452_v2  ;;  %v1291_v7 = vadd.f32 %v1279_v61, %v1240_v8 }
 0x135   : > { %5001 = vmatpush3.bf16.msra.mxu1 %v5280_v57 }
 0x136   : > { %5014 = vmatprep.subr.bf16.mxu1 %v5452_v2 }
 0x139   : > { %v4896_v62 = vpop.f32.mrf.mxu0 }
 0x13a   : > { %v4908_v9 = vpop.f32.mrf.mxu1  ;;  %v1357_v30 = vadd.f32 %v4896_v62, %v1292_v26  ;;  %v5286_v26 = vld [vmem:[%s6567_s6 + $0x98] sm:$0xff]  }
 0x13b   : > { %v1341_v0 = vpop.f32.mrf.mxu0 }
 0x13c   : > { %v1355_v3 = vadd.f32 %v1341_v0, %v1290_v63  ;;  %v1413_v4 = vpop.f32.mrf.mxu1  ;;  %v1429_v35 = vadd.f32 %v4908_v9, %v1357_v30  ;;  %v5288_v30 = vld [vmem:[%s6567_s6 + $0xb8] sm:$0xff]  }
 0x13d   : > { %v4897_v6 = vpop.f32.mrf.mxu0 }
 0x13e   : > { %v4909_v10 = vpop.f32.mrf.mxu1  ;;  %v1427_v12 = vadd.f32 %v1413_v4, %v1355_v3  ;;  %v1432_v37 = vmax.f32 %v1429_v35, 0.0  ;;  %v5281_v3 = vld [vmem:[%s6567_s6 + $0xc0] sm:$0xff]   ;;  %v5290_v35 = vld [vmem:[%s6567_s6 + $0xd8] sm:$0xff]  }
 0x13f   : > { %v1344_v11 = vpop.f32.mrf.mxu0 }
 0x140   : > { %v1356_v13 = vadd.f32 %v1344_v11, %v1291_v7  ;;  %v1416_v14 = vpop.f32.mrf.mxu1  ;;  %v1430_v16 = vmax.f32 %v1427_v12, 0.0  ;;  %v6074_v42 = vpack.c.bf16 %v1432_v37, %v1432_v37  ;;  %v5283_v12 = vld [vmem:[%s6567_s6 + $0xe8] sm:$0xff]  }
 0x142   : > { %v1428_v15 = vadd.f32 %v1416_v14, %v1356_v13  ;;  %v2487_v51 = vshrl.u32 %v6074_v42, 16  ;;  %v2490_v52 = vshll.u32 %v6074_v42, 16 }
 0x144   : > { %v1431_v17 = vmax.f32 %v1428_v15, 0.0  ;;  %v2489_v8 = vrot.slane %v2487_v51, 2  ;;  %v2492_v9 = vrot.slane %v2490_v52, 3  ;;  %v5295_v51 = vld [vmem:[%s6569_s8 + $0x38] sm:$0xff]  }
 0x146   : > { %v6039_v19 = vpack.c.bf16 %v1431_v17, %v1430_v16  ;;  %v2493_v11 = vor.u32 %v2492_v9, %v2489_v8  ;;  %v5284_v17 = vld [vmem:[%s6567_s6 + $0x70] sm:$0xff]   ;;  %v5301_v8 = vld [vmem:[%s6569_s8 + $0x20] sm:$0xff]  }
 0x147   : > { %v4261_v9 = vld [vmem:[%s6568_s7] ss:$0 sm:$0xff] }
 0x148   : > { %v2061_v21 = vshll.u32 %v6039_v19, 16  ;;  %4995 = vmatmul.mubr.msk.bf16.vlgmr.msra.gmra.mxu0 %vm1674_vm5, %v6039_v19  ;;  %v2059_v28 = vshrl.u32 %v6039_v19, 16 }
 0x149   : > { %v6045_v22 = vpop.f32.mrf.mxu0  ;;  %5007 = vmatpush3.bf16.msra.mxu0 %v5272_v18  ;;  %5010 = vmatprep.mubr.msk.bf16.mxu0 %vm5453_vm4, %v5452_v2  ;;  %v5285_v18 = vld [vmem:[%s6567_s6 + $0xe0] sm:$0xff]  }
 0x14a   : > { %v2063_v24 = vrot.slane %v2061_v21, 1  ;;  %v6052_v25 = vpop.f32.mrf.mxu1  ;;  %5008 = vmatprep.subr.bf16.mxu0 %v5452_v2  ;;  %v2483_v60 = vrot.slane %v2059_v28, 2  ;;  %v2484_v61 = vrot.slane %v2061_v21, 3  ;;  %v1485_v14 = vadd.f32 %v6045_v22, %v5970_v5 }
 0x14b   : > { %v1469_v27 = vpop.f32.mrf.mxu0  ;;  %v2635_v21 = vrot.slane %v6039_v19, 3 }
 0x14c   : > { %v1520_v29 = vpop.f32.mrf.mxu1  ;;  %v2064_v34 = vor.u32 %v2063_v24, %v2059_v28  ;;  %v1483_v39 = vadd.f32 %v5970_v5, %v1469_v27  ;;  %v2485_v6 = vor.u32 %v2484_v61, %v2483_v60  ;;  %v1536_v20 = vadd.f32 %v6052_v25, %v1485_v14  ;;  %v5287_v28 = vld [vmem:[%s6567_s6 + $0x90] sm:$0xff]   ;;  %v5298_v60 = vld [vmem:[%s6569_s8 + $0x8] sm:$0xff]  }
 0x14d   : > { %v4921_v31 = vpop.f32.mrf.mxu0  ;;  %5009 = vmatpush3.bf16.msra.mxu0 %v5273_v23  ;;  %v2636_v23 = vrot.slane %v6074_v42, 3  ;;  %v5292_v42 = vld [vmem:[%s6567_s6 + $0xf8] sm:$0xff]  }
 0x14e   : > { %v4933_v33 = vpop.f32.mrf.mxu1  ;;  %5022 = vmatprep.subr.bf16.mxu0 %v5452_v2  ;;  %v1534_v45 = vadd.f32 %v1520_v29, %v1483_v39  ;;  %v2494_v15 = vsel %vm1293_vm3, %v2485_v6, %v2493_v11  ;;  %v5291_v39 = vld [vmem:[%s6567_s6 + $0xd0] sm:$0xff]  }
 0x14f   : > { %v1472_v40 = vpop.f32.mrf.mxu0  ;;  %v2637_v27 = vsel %vm1591_vm1, %v2635_v21, %v2636_v23 }
 0x150   : > { %5011 = vmatmul.mubr.msk.bf16.vlgmr.msra.gmra.mxu0 %vm1674_vm5, %v2064_v34  ;;  %v1523_v41 = vpop.f32.mrf.mxu1  ;;  %v1484_v46 = vadd.f32 %v5970_v5, %v1472_v40 }
 0x151   : > { %5023 = vmatpush3.bf16.msra.mxu0 %v5274_v32  ;;  %5026 = vmatprep.mubr.msk.bf16.mxu0 %vm5453_vm4, %v5452_v2  ;;  %v5289_v32 = vld [vmem:[%s6567_s6 + $0xb0] sm:$0xff]  }
 0x152   : > { %5024 = vmatprep.subr.bf16.mxu0 %v5452_v2  ;;  %v1535_v55 = vadd.f32 %v1523_v41, %v1484_v46 }
 0x155   : > { %5025 = vmatpush3.bf16.msra.mxu0 %v5275_v36 }
 0x156   : > { %5038 = vmatprep.subr.bf16.mxu0 %v5452_v2 }
 0x158   : > { %5027 = vmatmul.mubr.msk.bf16.vlgmr.msra.gmra.mxu0 %vm1674_vm5, %v5995_v1 }
 0x159   : > { %v4944_v43 = vpop.f32.mrf.mxu0  ;;  %5039 = vmatpush3.bf16.msra.mxu0 %v5276_v38  ;;  %5042 = vmatprep.mubr.msk.bf16.mxu0 %vm5453_vm4, %v5452_v2 }
 0x15a   : > { %v6082_v47 = vpop.f32.mrf.mxu1  ;;  %5040 = vmatprep.subr.bf16.mxu0 %v5452_v2  ;;  %v1587_v24 = vadd.f32 %v4944_v43, %v1536_v20  ;;  %v5293_v43 = vld [vmem:[%s6567_s6 + $0xf0] sm:$0xff]  }
 0x15b   : > { %v1571_v49 = vpop.f32.mrf.mxu0 }
 0x15c   : > { %v1585_v1 = vadd.f32 %v1571_v49, %v1534_v45  ;;  %v1635_v50 = vpop.f32.mrf.mxu1  ;;  %v1651_v19 = vadd.f32 %v6082_v47, %v1587_v24 }
 0x15d   : > { %v4945_v53 = vpop.f32.mrf.mxu0  ;;  %5041 = vmatpush3.bf16.msra.mxu0 %v5277_v44 }
 0x15e   : > { %v4957_v57 = vpop.f32.mrf.mxu1  ;;  %5054 = vmatprep.subr.bf16.mxu0 %v5452_v2  ;;  %v1649_v62 = vadd.f32 %v1635_v50, %v1585_v1  ;;  %v1654_v29 = vmax.f32 %v1651_v19, 0.0  ;;  %v5294_v1 = vld [vmem:[%s6569_s8 + $0x18] sm:$0xff]  }
 0x15f   : > { %v1574_v58 = vpop.f32.mrf.mxu0  ;;  %v5297_v57 = vld [vmem:[%s6569_s8 + $0x30] sm:$0xff]  }
 0x160   : > { %v1586_v63 = vadd.f32 %v1574_v58, %v1535_v55  ;;  %5043 = vmatmul.mubr.msk.bf16.vlgmr.msra.gmra.mxu0 %vm1674_vm5, %v5990_v59  ;;  %v1638_v0 = vpop.f32.mrf.mxu1  ;;  %v1652_v7 = vmax.f32 %v1649_v62, 0.0  ;;  %v5282_v59 = vld [vmem:[%s6567_s6 + $0x78] sm:$0xff]   ;;  %v1656_v31 = vpack.c.bf16 %v1654_v29, %v1654_v29  ;;  %v5299_v62 = vld [vmem:[%s6569_s8 + $0x28] sm:$0xff]  }
 0x161   : > { %5055 = vmatpush3.bf16.msra.mxu0 %v5279_v54  ;;  %5058 = vmatprep.mubr.msk.bf16.mxu0 %vm5453_vm4, %v5452_v2  ;;  %v5296_v54 = vld [vmem:[%s6569_s8 + $0x10] sm:$0xff]  }
 0x162   : > { %v1650_v4 = vadd.f32 %v1638_v0, %v1586_v63  ;;  %5056 = vmatprep.subr.bf16.mxu0 %v5452_v2  ;;  %v2562_v33 = vshrl.u32 %v1656_v31, 16  ;;  %v2565_v34 = vshll.u32 %v1656_v31, 16  ;;  %v2704_v45 = vrot.slane %v1656_v31, 3  ;;  %v5300_v63 = vld [vmem:[%s6569_s8] sm:$0xff]  }
 0x164   : > { %v1653_v10 = vmax.f32 %v1650_v4, 0.0  ;;  %v2564_v37 = vrot.slane %v2562_v33, 2  ;;  %v2567_v38 = vrot.slane %v2565_v34, 3 }
 0x165   : > { %5057 = vmatpush3.bf16.msra.mxu0 %v5281_v3 }
 0x166   : > { %v6105_v13 = vpack.c.bf16 %v1653_v10, %v1652_v7  ;;  %5070 = vmatprep.subr.bf16.mxu0 %v5452_v2  ;;  %v2568_v41 = vor.u32 %v2567_v38, %v2564_v37 }
 0x168   : > { %v2130_v16 = vshll.u32 %v6105_v13, 16  ;;  %5003 = vmatmul.mubr.msk.bf16.vlgmr.msra.gmra.mxu1 %vm1674_vm5, %v6105_v13  ;;  %5059 = vmatmul.mubr.msk.bf16.vlgmr.msra.gmra.mxu0 %vm1674_vm5, %v2494_v15  ;;  %v2128_v22 = vshrl.u32 %v6105_v13, 16  ;;  %v2703_v44 = vrot.slane %v6105_v13, 3 }
 0x169   : > { %5015 = vmatpush3.bf16.msra.mxu1 %v5282_v59  ;;  %5071 = vmatpush3.bf16.msra.mxu0 %v5283_v12 }
 0x16a   : > { %v2132_v5 = vrot.slane %v2130_v16, 1  ;;  %5016 = vmatprep.subr.bf16.mxu1 %v5452_v2  ;;  %5072 = vmatprep.subr.bf16.mxu0 %v5452_v2  ;;  %v2559_v36 = vrot.slane %v2130_v16, 3  ;;  %v2705_v46 = vsel %vm1591_vm1, %v2703_v44, %v2704_v45 }
 0x16b   : > { %5018 = vmatprep.mubr.msk.bf16.mxu1 %vm5453_vm4, %v5452_v2  ;;  %5074 = vmatprep.mubr.msk.bf16.mxu0 %vm5453_vm4, %v5452_v2 }
 0x16c   : > { %v2133_v25 = vor.u32 %v2132_v5, %v2128_v22 }
 0x16d   : > { %5017 = vmatpush3.bf16.msra.mxu1 %v5284_v17  ;;  %5073 = vmatpush3.bf16.msra.mxu0 %v5285_v18 }
 0x16e   : > { %5030 = vmatprep.subr.bf16.mxu1 %v5452_v2  ;;  %5086 = vmatprep.subr.bf16.mxu0 %v5452_v2 }
 0x170   : > { %5019 = vmatmul.mubr.msk.bf16.vlgmr.msra.gmra.mxu1 %vm1674_vm5, %v2133_v25  ;;  %5075 = vmatmul.mubr.msk.bf16.vlgmr.msra.gmra.mxu0 %vm1674_vm5, %v2637_v27 }
 0x171   : > { %5031 = vmatpush3.bf16.msra.mxu1 %v5286_v26  ;;  %5034 = vmatprep.mubr.msk.bf16.mxu1 %vm5453_vm4, %v5452_v2 }
 0x172   : > { %5032 = vmatprep.subr.bf16.mxu1 %v5452_v2  ;;  %5094 = vmatprep.mubr.msk.bf16.mxu0 %vm5453_vm4, %v5452_v2 }
 0x173   : > { %5087 = vmatpush3.bf16.msra.mxu0 %v5294_v1 }
 0x174   : > { %5088 = vmatprep.subr.bf16.mxu0 %v5452_v2 }
 0x175   : > { %5033 = vmatpush3.bf16.msra.mxu1 %v5287_v28 }
 0x176   : > { %5046 = vmatprep.subr.bf16.mxu1 %v5452_v2 }
 0x177   : > { %5089 = vmatpush3.bf16.msra.mxu0 %v5296_v54 }
 0x178   : > { %5035 = vmatmul.mubr.msk.bf16.vlgmr.msra.gmra.mxu1 %vm1674_vm5, %v6024_v56  ;;  %v2558_v56 = vrot.slane %v2128_v22, 2  ;;  %5090 = vmatprep.subr.bf16.mxu0 %v5452_v2 }
 0x179   : > { %5047 = vmatpush3.bf16.msra.mxu1 %v5288_v30  ;;  %5050 = vmatprep.mubr.msk.bf16.mxu1 %vm5453_vm4, %v5452_v2 }
 0x17a   : > { %5048 = vmatprep.subr.bf16.mxu1 %v5452_v2  ;;  %v2560_v40 = vor.u32 %v2559_v36, %v2558_v56 }
 0x17b   : > { %5091 = vmatpush3.bf16.msra.mxu0 %v5298_v60 }
 0x17c   : > { %5092 = vmatprep.subr.bf16.mxu0 %v5452_v2 }
 0x17d   : > { %5049 = vmatpush3.bf16.msra.mxu1 %v5289_v32 }
 0x17e   : > { %5062 = vmatprep.subr.bf16.mxu1 %v5452_v2 }
 0x17f   : > { %5093 = vmatpush3.bf16.msra.mxu0 %v5300_v63 }
 0x180   : > { %5051 = vmatmul.mubr.msk.bf16.vlgmr.msra.gmra.mxu1 %vm1674_vm5, %v6017_v48  ;;  %v2569_v48 = vsel %vm1293_vm3, %v2560_v40, %v2568_v41  ;;  %5110 = vmatprep.subr.bf16.mxu0 %v5452_v2 }
 0x181   : > { %5063 = vmatpush3.bf16.msra.mxu1 %v5290_v35  ;;  %5066 = vmatprep.mubr.msk.bf16.mxu1 %vm5453_vm4, %v5452_v2 }
 0x182   : > { %5064 = vmatprep.subr.bf16.mxu1 %v5452_v2 }
 0x185   : > { %5065 = vmatpush3.bf16.msra.mxu1 %v5291_v39 }
 0x186   : > { %5078 = vmatprep.subr.bf16.mxu1 %v5452_v2 }
 0x188   : > { %5067 = vmatmul.mubr.msk.bf16.vlgmr.msra.gmra.mxu1 %vm1674_vm5, %v2569_v48 }
 0x189   : > { %5079 = vmatpush3.bf16.msra.mxu1 %v5292_v42  ;;  %5082 = vmatprep.mubr.msk.bf16.mxu1 %vm5453_vm4, %v5452_v2 }
 0x18a   : > { %5080 = vmatprep.subr.bf16.mxu1 %v5452_v2 }
 0x18d   : > { %5081 = vmatpush3.bf16.msra.mxu1 %v5293_v43 }
 0x18e   : > { %5098 = vmatprep.subr.bf16.mxu1 %v5452_v2 }
 0x190   : > { %5083 = vmatmul.mubr.msk.bf16.vlgmr.msra.gmra.mxu1 %vm1674_vm5, %v2705_v46 }
 0x191   : > { %5106 = vmatprep.mubr.msk.bf16.mxu1 %vm5453_vm4, %v5452_v2  ;;  %5099 = vmatpush3.bf16.msra.mxu1 %v5295_v51 }
 0x192   : > { %5100 = vmatprep.subr.bf16.mxu1 %v5452_v2 }
 0x195   : > { %5101 = vmatpush3.bf16.msra.mxu1 %v5297_v57 }
 0x196   : > { %5102 = vmatprep.subr.bf16.mxu1 %v5452_v2 }
 0x199   : > { %5103 = vmatpush3.bf16.msra.mxu1 %v5299_v62 }
 0x19a   : > { %5104 = vmatprep.subr.bf16.mxu1 %v5452_v2 }
 0x19d   : > { %5105 = vmatpush3.bf16.msra.mxu1 %v5301_v8 }
 0x19e   : > { %5122 = vmatprep.subr.bf16.mxu1 %v5452_v2 }
 0x1c8   : > { %v1712_v47 = vpop.f32.mrf.mxu1 }
 0x1c9   : > { %v1725_v0 = vadd.f32 %v4261_v9, %v1712_v47 }
 0x1ca   : > { %v4964_v49 = vpop.f32.mrf.mxu1 }
 0x1cc   : > { %v1715_v50 = vpop.f32.mrf.mxu1 }
 0x1cd   : > { %v1726_v7 = vadd.f32 %v4261_v9, %v1715_v50 }
 0x1ce   : > { %v4965_v52 = vpop.f32.mrf.mxu1  ;;  %v1850_v53 = vpop.f32.mrf.mxu0 }
 0x1d0   : > { %v4980_v55 = vpop.f32.mrf.mxu0 }
 0x1d2   : > { %v1853_v58 = vpop.f32.mrf.mxu0 }
 0x1d4   : > { %v4981_v61 = vpop.f32.mrf.mxu0 }
 0x1e8   : > { %v1781_v3 = vpop.f32.mrf.mxu1 }
 0x1e9   : > { %v1788_v4 = vadd.f32 %v1781_v3, %v1725_v0 }
 0x1ea   : > { %v4972_v6 = vpop.f32.mrf.mxu1 }
 0x1eb   : > { %v1857_v10 = vadd.f32 %v1850_v53, %v1788_v4 }
 0x1ec   : > { %v1784_v11 = vpop.f32.mrf.mxu1 }
 0x1ed   : > { %v1789_v59 = vadd.f32 %v1784_v11, %v1726_v7 }
 0x1ee   : > { %v4973_v12 = vpop.f32.mrf.mxu1 }
 0x1ef   : > { %v1858_v13 = vadd.f32 %v1853_v58, %v1789_v59 }
 0x1f0   : > { %v1919_v14 = vpop.f32.mrf.mxu1 }
 0x1f1   : > { %v1926_v15 = vadd.f32 %v1919_v14, %v1857_v10 }
 0x1f2   : > { %v4988_v16 = vpop.f32.mrf.mxu1 }
 0x1f4   : > { %v1922_v17 = vpop.f32.mrf.mxu1 }
 0x1f5   : > { %v1927_v18 = vadd.f32 %v1922_v17, %v1858_v13 }
 0x1f6   : > { %v4989_v5 = vpop.f32.mrf.mxu1 }
 0x208   : > { %v1982_v20 = vpop.f32.mrf.mxu0 }
 0x209   : > { %v1989_v45 = vadd.f32 %v1982_v20, %v1926_v15 }
 0x20a   : > { %v4996_v21 = vpop.f32.mrf.mxu0 }
 0x20c   : > { %v1985_v22 = vpop.f32.mrf.mxu0 }
 0x20d   : > { %v1990_v49 = vadd.f32 %v1985_v22, %v1927_v18 }
 0x20e   : > { %v4997_v23 = vpop.f32.mrf.mxu0 }
 0x210   : > { %v2114_v24 = vpop.f32.mrf.mxu0 }
 0x212   : > { %v5012_v26 = vpop.f32.mrf.mxu0 }
 0x214   : > { %v2117_v25 = vpop.f32.mrf.mxu0 }
 0x216   : > { %v5013_v27 = vpop.f32.mrf.mxu0 }
 0x218   : > { %v2258_v19 = vpop.f32.mrf.mxu0 }
 0x21a   : > { %v5028_v28 = vpop.f32.mrf.mxu0 }
 0x21c   : > { %v2261_v29 = vpop.f32.mrf.mxu0 }
 0x21e   : > { %v5029_v30 = vpop.f32.mrf.mxu0 }
 0x21f   : > { %v5302_v30 = vld [vmem:[%s6569_s8 + $0x58] sm:$0xff]  }
 0x220   : > { %v2401_v31 = vpop.f32.mrf.mxu0 }
 0x222   : > { %v5044_v32 = vpop.f32.mrf.mxu0 }
 0x223   : > { %v5303_v32 = vld [vmem:[%s6569_s8 + $0x78] sm:$0xff]  }
 0x224   : > { %v2404_v33 = vpop.f32.mrf.mxu0 }
 0x226   : > { %v5045_v34 = vpop.f32.mrf.mxu0 }
 0x227   : > { %v5304_v34 = vld [vmem:[%s6569_s8 + $0x50] sm:$0xff]  }
 0x228   : > { %v2045_v35 = vpop.f32.mrf.mxu1  ;;  %v2544_v56 = vpop.f32.mrf.mxu0 }
 0x229   : > { %v2052_v1 = vadd.f32 %v2045_v35, %v1989_v45  ;;  %v5305_v35 = vld [vmem:[%s6569_s8 + $0x70] sm:$0xff]   ;;  %v5315_v45 = vld [vmem:[%s6569_s8 + $0xa8] sm:$0xff]  }
 0x22a   : > { %v5004_v36 = vpop.f32.mrf.mxu1  ;;  %v5060_v37 = vpop.f32.mrf.mxu0 }
 0x22b   : > { %v2121_v54 = vadd.f32 %v2114_v24, %v2052_v1  ;;  %v5307_v36 = vld [vmem:[%s6569_s8 + $0x68] sm:$0xff]   ;;  %v5308_v37 = vld [vmem:[%s6569_s8 + $0x40] sm:$0xff]  }
 0x22c   : > { %v2048_v38 = vpop.f32.mrf.mxu1  ;;  %v2547_v39 = vpop.f32.mrf.mxu0 }
 0x22d   : > { %v2053_v52 = vadd.f32 %v2048_v38, %v1990_v49  ;;  %v5309_v38 = vld [vmem:[%s6569_s8 + $0x60] sm:$0xff]   ;;  %v5318_v49 = vld [vmem:[%s6569_s8 + $0xd8] sm:$0xff]  }
 0x22e   : > { %v5005_v40 = vpop.f32.mrf.mxu1  ;;  %v5061_v41 = vpop.f32.mrf.mxu0 }
 0x22f   : > { %v2122_v58 = vadd.f32 %v2117_v25, %v2053_v52  ;;  %v5311_v41 = vld [vmem:[%s6569_s8 + $0xb8] sm:$0xff]   ;;  %v5320_v52 = vld [vmem:[%s6569_s8 + $0xd0] sm:$0xff]  }
 0x230   : > { %v2183_v42 = vpop.f32.mrf.mxu1  ;;  %v2687_v48 = vpop.f32.mrf.mxu0 }
 0x231   : > { %v2190_v57 = vadd.f32 %v2183_v42, %v2121_v54  ;;  %v5322_v54 = vld [vmem:[%s6569_s8 + $0xc8] sm:$0xff]  }
 0x232   : > { %v5020_v43 = vpop.f32.mrf.mxu1  ;;  %v5076_v44 = vpop.f32.mrf.mxu0 }
 0x233   : > { %v2265_v63 = vadd.f32 %v2258_v19, %v2190_v57  ;;  %v5313_v43 = vld [vmem:[%s6569_s8 + $0xb0] sm:$0xff]   ;;  %v5314_v44 = vld [vmem:[%s6569_s8 + $0x88] sm:$0xff]   ;;  %v5324_v57 = vld [vmem:[%s6569_s8 + $0xc0] sm:$0xff]  }
 0x234   : > { %v2186_v46 = vpop.f32.mrf.mxu1  ;;  %v2690_v47 = vpop.f32.mrf.mxu0 }
 0x235   : > { %v2191_v61 = vadd.f32 %v2186_v46, %v2122_v58  ;;  %v5316_v46 = vld [vmem:[%s6569_s8 + $0x80] sm:$0xff]  }
 0x236   : > { %v5021_v50 = vpop.f32.mrf.mxu1  ;;  %v5077_v51 = vpop.f32.mrf.mxu0  ;;  %v5325_v58 = vld [vmem:[%s6569_s8 + $0xe0] sm:$0xff]  }
 0x237   : > { %v2266_v0 = vadd.f32 %v2261_v29, %v2191_v61  ;;  %v5319_v50 = vld [vmem:[%s6569_s8 + $0xf8] sm:$0xff]  }
 0x238   : > { %v2333_v53 = vpop.f32.mrf.mxu1 }
 0x239   : > { %v2340_v9 = vadd.f32 %v2333_v53, %v2265_v63  ;;  %v5321_v53 = vld [vmem:[%s6569_s8 + $0xf0] sm:$0xff]  }
 0x23a   : > { %v5036_v55 = vpop.f32.mrf.mxu1  ;;  %v5327_v63 = vld [vmem:[%s6569_s8 + $0x110] sm:$0xff]  }
 0x23b   : > { %v2408_v7 = vadd.f32 %v2401_v31, %v2340_v9  ;;  %v5323_v55 = vld [vmem:[%s6569_s8 + $0xe8] sm:$0xff]   ;;  %v5329_v9 = vld [vmem:[%s6569_s8 + $0x100] sm:$0xff]  }
 0x23c   : > { %v2336_v60 = vpop.f32.mrf.mxu1 }
 0x23d   : > { %v2341_v4 = vadd.f32 %v2336_v60, %v2266_v0  ;;  %v5326_v60 = vld [vmem:[%s6569_s8 + $0x118] sm:$0xff]  }
 0x23e   : > { %v5037_v62 = vpop.f32.mrf.mxu1 }
 0x23f   : > { %v2409_v59 = vadd.f32 %v2404_v33, %v2341_v4  ;;  %v5335_v4 = vld [vmem:[%s6571_s10 + $0x6c] ss:$16 sps:$4 sm:$0xff]  }
 0x240   : > { %v2469_v8 = vpop.f32.mrf.mxu1 }
 0x241   : > { %v2476_v11 = vadd.f32 %v2469_v8, %v2408_v7  ;;  %v5328_v8 = vld [vmem:[%s6569_s8 + $0x108] sm:$0xff]   ;;  %v5336_v7 = vld [vmem:[%s6571_s10 + $0x40] ss:$16 sps:$4 sm:$0xff]  }
 0x242   : > { %v5052_v3 = vpop.f32.mrf.mxu1 }
 0x243   : > { %v2551_v15 = vadd.f32 %v2544_v56, %v2476_v11  ;;  %v5306_v56 = vld [vmem:[%s6569_s8 + $0x48] sm:$0xff]   ;;  %v5332_v3 = vld [vmem:[%s6571_s10 + $0x64] ss:$16 sps:$4 sm:$0xff]  }
 0x244   : > { %v2472_v6 = vpop.f32.mrf.mxu1  ;;  %v5339_v11 = vld [vmem:[%s6571_s10 + $0x48] ss:$16 sps:$4 sm:$0xff]  }
 0x245   : > { %v2477_v13 = vadd.f32 %v2472_v6, %v2409_v59  ;;  %v5330_v6 = vld [vmem:[%s6571_s10 + $0x60] ss:$16 sps:$4 sm:$0xff]   ;;  %v5341_v59 = vld [vmem:[%s6571_s10 + $0x4c] ss:$16 sps:$4 sm:$0xff]  }
 0x246   : > { %v5053_v10 = vpop.f32.mrf.mxu1 }
 0x247   : > { %v2552_v18 = vadd.f32 %v2547_v39, %v2477_v13  ;;  %v5310_v39 = vld [vmem:[%s6569_s8 + $0x98] sm:$0xff]   ;;  %v5338_v10 = vld [vmem:[%s6571_s10 + $0x44] ss:$16 sps:$4 sm:$0xff]  }
 0x248   : > { %v2619_v12 = vpop.f32.mrf.mxu1  ;;  %v5347_v13 = vld [vmem:[%s6571_s10 + $0x2c] ss:$16 sps:$4 sm:$0xff]  }
 0x249   : > { %v2626_v17 = vadd.f32 %v2619_v12, %v2551_v15  ;;  %v5344_v12 = vld [vmem:[%s6571_s10 + $0x24] ss:$16 sps:$4 sm:$0xff]   ;;  %v5345_v15 = vld [vmem:[%s6571_s10 + $0x28] ss:$16 sps:$4 sm:$0xff]  }
 0x24a   : > { %v5068_v14 = vpop.f32.mrf.mxu1 }
 0x24b   : > { %v2694_v22 = vadd.f32 %v2687_v48, %v2626_v17  ;;  %v5312_v48 = vld [vmem:[%s6569_s8 + $0x90] sm:$0xff]   ;;  %v5353_v17 = vld [vmem:[%s6571_s10 + $0xc] ss:$16 sps:$4 sm:$0xff]  }
 0x24c   : > { %v2622_v16 = vpop.f32.mrf.mxu1  ;;  %v5342_v14 = vld [vmem:[%s6571_s10 + $0x20] ss:$16 sps:$4 sm:$0xff]  }
 0x24d   : > { %v2627_v20 = vadd.f32 %v2622_v16, %v2552_v18  ;;  %v5350_v16 = vld [vmem:[%s6571_s10 + $0x4] ss:$16 sps:$4 sm:$0xff]   ;;  %v5348_v18 = vld [vmem:[%s6571_s10] ss:$16 sps:$4 sm:$0xff]  }
 0x24e   : > { %v5069_v5 = vpop.f32.mrf.mxu1 }
 0x24f   : > { %v2695_v26 = vadd.f32 %v2690_v47, %v2627_v20  ;;  %v5317_v47 = vld [vmem:[%s6569_s8 + $0xa0] sm:$0xff]   ;;  %v5351_v5 = vld [vmem:[%s6571_s10 + $0x8] ss:$16 sps:$4 sm:$0xff]   ;;  %v5454_v20 = vmov 0  }
 0x250   : > { %v2755_v21 = vpop.f32.mrf.mxu1 }
 0x251   : > { %v2762_v24 = vadd.f32 %v2755_v21, %v2694_v22  ;;  %v5354_v21 = vld [vmem:[%s6573_s12 + $0x78] sm:$0xff]  }
 0x252   : > { %v5084_v23 = vpop.f32.mrf.mxu1  ;;  %v5355_v22 = vld [vmem:[%s6573_s12 + $0xf8] sm:$0xff]  }
 0x253   : > { %v2764_v28 = vmax.f32 %v2762_v24, 0.0 }
 0x254   : > { %v2758_v25 = vpop.f32.mrf.mxu1 }
 0x255   : > { %v2763_v27 = vadd.f32 %v2758_v25, %v2695_v26 }
 0x256   : > { %v5085_v19 = vpop.f32.mrf.mxu1 }
 0x257   : > { %v2765_v29 = vmax.f32 %v2763_v27, 0.0 }
 0x259   : > { %v6228_v31 = vpack.c.bf16 %v2765_v29, %v2764_v28 }
 0x25b   : > { %5095 = vmatmul.mubr.msk.bf16.vlgmr.msra.gmra.mxu0 %vm580_vm0, %v6228_v31  ;;  %v6236_v33 = vshrl.u32 %v6228_v31, 16  ;;  %v2933_v40 = vrot.slane %v6228_v31, 1  ;;  %v3089_v1 = vrot.slane %v6228_v31, 3  ;;  %v3245_v61 = vrot.slane %v6228_v31, 5 }
 0x25c   : > { %5111 = vmatpush3.bf16.msra.mxu0 %v5302_v30  ;;  %5118 = vmatprep.mubr.msk.bf16.mxu0 %vm5453_vm4, %v5452_v2  ;;  %v3401_v0 = vrot.slane %v6228_v31, 6 }
 0x25d   : > { %5107 = vmatmul.mubr.msk.bf16.vlgmr.msra.gmra.mxu1 %vm580_vm0, %v6236_v33  ;;  %5112 = vmatprep.subr.bf16.mxu0 %v5452_v2  ;;  %v3011_v42 = vrot.slane %v6236_v33, 2  ;;  %v3167_v51 = vrot.slane %v6236_v33, 3  ;;  %v3323_v62 = vrot.slane %v6236_v33, 5 }
 0x25e   : > { %5123 = vmatpush3.bf16.msra.mxu1 %v5303_v32  ;;  %5130 = vmatprep.mubr.msk.bf16.mxu1 %vm5453_vm4, %v5452_v2 }
 0x25f   : > { %5124 = vmatprep.subr.bf16.mxu1 %v5452_v2 }
 0x260   : > { %5113 = vmatpush3.bf16.msra.mxu0 %v5304_v34 }
 0x261   : > { %5114 = vmatprep.subr.bf16.mxu0 %v5452_v2 }
 0x262   : > { %5125 = vmatpush3.bf16.msra.mxu1 %v5305_v35 }
 0x263   : > { %5126 = vmatprep.subr.bf16.mxu1 %v5452_v2 }
 0x264   : > { %5115 = vmatpush3.bf16.msra.mxu0 %v5306_v56 }
 0x265   : > { %5116 = vmatprep.subr.bf16.mxu0 %v5452_v2 }
 0x266   : > { %5127 = vmatpush3.bf16.msra.mxu1 %v5307_v36 }
 0x267   : > { %5128 = vmatprep.subr.bf16.mxu1 %v5452_v2 }
 0x268   : > { %5117 = vmatpush3.bf16.msra.mxu0 %v5308_v37 }
 0x269   : > { %5134 = vmatprep.subr.bf16.mxu0 %v5452_v2 }
 0x26a   : > { %5129 = vmatpush3.bf16.msra.mxu1 %v5309_v38 }
 0x26b   : > { %5119 = vmatmul.mubr.msk.bf16.vlgmr.msra.gmra.mxu0 %vm580_vm0, %v2933_v40  ;;  %5146 = vmatprep.subr.bf16.mxu1 %v5452_v2 }
 0x26c   : > { %5135 = vmatpush3.bf16.msra.mxu0 %v5310_v39  ;;  %5142 = vmatprep.mubr.msk.bf16.mxu0 %vm5453_vm4, %v5452_v2 }
 0x26d   : > { %5131 = vmatmul.mubr.msk.bf16.vlgmr.msra.gmra.mxu1 %vm580_vm0, %v3011_v42  ;;  %5136 = vmatprep.subr.bf16.mxu0 %v5452_v2  ;;  %v2767_v42 = vld [vmem:[%s6570_s9] sm:$0x1] }
 0x26e   : > { %5147 = vmatpush3.bf16.msra.mxu1 %v5311_v41  ;;  %5154 = vmatprep.mubr.msk.bf16.mxu1 %vm5453_vm4, %v5452_v2 }
 0x26f   : > { %5148 = vmatprep.subr.bf16.mxu1 %v5452_v2 }
 0x270   : > { %5137 = vmatpush3.bf16.msra.mxu0 %v5312_v48 }
 0x271   : > { %5138 = vmatprep.subr.bf16.mxu0 %v5452_v2 }
 0x272   : > { %5149 = vmatpush3.bf16.msra.mxu1 %v5313_v43 }
 0x273   : > { %5150 = vmatprep.subr.bf16.mxu1 %v5452_v2 }
 0x274   : > { %5139 = vmatpush3.bf16.msra.mxu0 %v5314_v44 }
 0x275   : > { %5140 = vmatprep.subr.bf16.mxu0 %v5452_v2 }
 0x276   : > { %5151 = vmatpush3.bf16.msra.mxu1 %v5315_v45 }
 0x277   : > { %5152 = vmatprep.subr.bf16.mxu1 %v5452_v2 }
 0x278   : > { %5141 = vmatpush3.bf16.msra.mxu0 %v5316_v46 }
 0x279   : > { %5158 = vmatprep.subr.bf16.mxu0 %v5452_v2 }
 0x27a   : > { %5153 = vmatpush3.bf16.msra.mxu1 %v5317_v47 }
 0x27b   : > { %5143 = vmatmul.mubr.msk.bf16.vlgmr.msra.gmra.mxu0 %vm580_vm0, %v3089_v1  ;;  %5170 = vmatprep.subr.bf16.mxu1 %v5452_v2 }
 0x27c   : > { %5159 = vmatpush3.bf16.msra.mxu0 %v5318_v49  ;;  %5166 = vmatprep.mubr.msk.bf16.mxu0 %vm5453_vm4, %v5452_v2 }
 0x27d   : > { %5155 = vmatmul.mubr.msk.bf16.vlgmr.msra.gmra.mxu1 %vm580_vm0, %v3167_v51  ;;  %5160 = vmatprep.subr.bf16.mxu0 %v5452_v2 }
 0x27e   : > { %5171 = vmatpush3.bf16.msra.mxu1 %v5319_v50  ;;  %5178 = vmatprep.mubr.msk.bf16.mxu1 %vm5453_vm4, %v5452_v2 }
 0x27f   : > { %5172 = vmatprep.subr.bf16.mxu1 %v5452_v2 }
 0x280   : > { %5161 = vmatpush3.bf16.msra.mxu0 %v5320_v52 }
 0x281   : > { %5162 = vmatprep.subr.bf16.mxu0 %v5452_v2 }
 0x282   : > { %5173 = vmatpush3.bf16.msra.mxu1 %v5321_v53 }
 0x283   : > { %5174 = vmatprep.subr.bf16.mxu1 %v5452_v2 }
 0x284   : > { %5163 = vmatpush3.bf16.msra.mxu0 %v5322_v54 }
 0x285   : > { %5164 = vmatprep.subr.bf16.mxu0 %v5452_v2 }
 0x286   : > { %5175 = vmatpush3.bf16.msra.mxu1 %v5323_v55 }
 0x287   : > { %5176 = vmatprep.subr.bf16.mxu1 %v5452_v2 }
 0x288   : > { %5165 = vmatpush3.bf16.msra.mxu0 %v5324_v57 }
 0x289   : > { %5182 = vmatprep.subr.bf16.mxu0 %v5452_v2 }
 0x28a   : > { %5177 = vmatpush3.bf16.msra.mxu1 %v5325_v58 }
 0x28b   : > { %5167 = vmatmul.mubr.msk.bf16.vlgmr.msra.gmra.mxu0 %vm580_vm0, %v3245_v61  ;;  %3580 = vmatprep.subr.bf16.mxu1 %v5332_v3 }
 0x28c   : > { %5183 = vmatpush3.bf16.msra.mxu0 %v5326_v60  ;;  %5190 = vmatprep.mubr.msk.bf16.mxu0 %vm5453_vm4, %v5452_v2 }
 0x28d   : > { %5179 = vmatmul.mubr.msk.bf16.vlgmr.msra.gmra.mxu1 %vm580_vm0, %v3323_v62  ;;  %5184 = vmatprep.subr.bf16.mxu0 %v5452_v2 }
 0x28e   : > { %3581 = vmatpush1.bf16.msra.mxu1 %v5330_v6  ;;  %3604 = vmatprep.mubr.bf16.mxu1 %v5454_v20  ;;  %v5357_v6 = vld [vmem:[%s6573_s12 + $0xb8] sm:$0xff]  }
 0x28f   : > { %3582 = vmatprep.subr.bf16.mxu1 %v5338_v10  ;;  %v5359_v10 = vld [vmem:[%s6573_s12 + $0xf0] sm:$0xff]  }
 0x290   : > { %5185 = vmatpush3.bf16.msra.mxu0 %v5327_v63 }
 0x291   : > { %5186 = vmatprep.subr.bf16.mxu0 %v5452_v2 }
 0x292   : > { %3583 = vmatpush1.bf16.msra.mxu1 %v5336_v7  ;;  %v5358_v7 = vld [vmem:[%s6573_s12 + $0x70] sm:$0xff]  }
 0x293   : > { %3584 = vmatprep.subr.bf16.mxu1 %v5344_v12  ;;  %v5361_v12 = vld [vmem:[%s6573_s12 + $0xb0] sm:$0xff]  }
 0x294   : > { %5187 = vmatpush3.bf16.msra.mxu0 %v5328_v8 }
 0x295   : > { %5188 = vmatprep.subr.bf16.mxu0 %v5452_v2  ;;  %v5333_v2 = vld [vmem:[%s6571_s10 + $0x68] ss:$16 sps:$4 sm:$0xff]  }
 0x296   : > { %3585 = vmatpush1.bf16.msra.mxu1 %v5342_v14  ;;  %v5363_v14 = vld [vmem:[%s6573_s12 + $0xe8] sm:$0xff]  }
 0x297   : > { %3586 = vmatprep.subr.bf16.mxu1 %v5350_v16  ;;  %v5365_v16 = vld [vmem:[%s6573_s12 + $0xa8] sm:$0xff]  }
 0x298   : > { %5189 = vmatpush3.bf16.msra.mxu0 %v5329_v9 }
 0x299   : > { %3621 = vmatprep.subr.bf16.mxu0 %v5335_v4  ;;  %v5356_v4 = vld [vmem:[%s6573_s12 + $0x38] sm:$0xff]  }
 0x29a   : > { %3587 = vmatpush1.bf16.msra.mxu1 %v5348_v18  ;;  %v5367_v18 = vld [vmem:[%s6573_s12 + $0xe0] sm:$0xff]  }
 0x29b   : > { %5191 = vmatmul.mubr.msk.bf16.vlgmr.msra.gmra.mxu0 %vm580_vm0, %v3401_v0  ;;  %4722 = vmatprep.subr.bf16.mxu1 %v5354_v21  ;;  %v5370_v21 = vld [vmem:[%s6573_s12 + $0x58] sm:$0xff]  }
 0x29c   : > { %3622 = vmatpush1.bf16.msra.mxu0 %v5333_v2  ;;  %3645 = vmatprep.mubr.bf16.mxu0 %v5454_v20  ;;  %v5369_v20 = vld [vmem:[%s6573_s12 + $0xa0] sm:$0xff]  }
 0x29d   : > { %3623 = vmatprep.subr.bf16.mxu0 %v5341_v59  ;;  %v5360_v59 = vld [vmem:[%s6573_s12 + $0x30] sm:$0xff]  }
 0x2a0   : > { %3624 = vmatpush1.bf16.msra.mxu0 %v5339_v11 }
 0x2a1   : > { %3625 = vmatprep.subr.bf16.mxu0 %v5347_v13  ;;  %v5362_v13 = vld [vmem:[%s6573_s12 + $0x68] sm:$0xff]  }
 0x2a4   : > { %3626 = vmatpush1.bf16.msra.mxu0 %v5345_v15  ;;  %v5364_v15 = vld [vmem:[%s6573_s12 + $0x28] sm:$0xff]  }
 0x2a5   : > { %3627 = vmatprep.subr.bf16.mxu0 %v5353_v17  ;;  %v5366_v17 = vld [vmem:[%s6573_s12 + $0x60] sm:$0xff]  }
 0x2a8   : > { %3628 = vmatpush1.bf16.msra.mxu0 %v5351_v5  ;;  %v5368_v5 = vld [vmem:[%s6573_s12 + $0x20] sm:$0xff]  }
 0x2a9   : > { %4744 = vmatprep.subr.bf16.mxu0 %v5355_v22  ;;  %v5371_v22 = vld [vmem:[%s6573_s12 + $0xd8] sm:$0xff]  }
 0x31b   : > { %v2837_v23 = vpop.f32.mrf.mxu0 }
 0x31c   : > { %v2843_v45 = vadd.f32 %v2837_v23, %v2767_v42  ;;  %v5372_v23 = vld [vmem:[%s6573_s12 + $0x18] sm:$0xff]  }
 0x31d   : > { %v5096_v24 = vpop.f32.mrf.mxu0  ;;  %v2916_v26 = vpop.f32.mrf.mxu1 }
 0x31e   : > { %v2922_v46 = vadd.f32 %v2916_v26, %v2843_v45  ;;  %v5373_v24 = vld [vmem:[%s6573_s12 + $0x98] sm:$0xff]   ;;  %v5374_v26 = vld [vmem:[%s6573_s12 + $0x50] sm:$0xff]  }
 0x31f   : > { %v2840_v25 = vpop.f32.mrf.mxu0  ;;  %v5108_v27 = vpop.f32.mrf.mxu1 }
 0x320   : > { %v5375_v25 = vld [vmem:[%s6573_s12 + $0xd0] sm:$0xff]  }
 0x321   : > { %v5097_v19 = vpop.f32.mrf.mxu0  ;;  %v2919_v28 = vpop.f32.mrf.mxu1  ;;  %v5376_v27 = vld [vmem:[%s6573_s12 + $0x10] sm:$0xff]  }
 0x322   : > { %v5377_v19 = vld [vmem:[%s6573_s12 + $0x90] sm:$0xff]   ;;  %v5378_v28 = vld [vmem:[%s6573_s12 + $0x48] sm:$0xff]  }
 0x323   : > { %v5109_v29 = vpop.f32.mrf.mxu1 }
 0x324   : > { %v5379_v29 = vld [vmem:[%s6573_s12 + $0xc8] sm:$0xff]  }
 0x32b   : > { %v2995_v30 = vpop.f32.mrf.mxu0 }
 0x32c   : > { %v3001_v47 = vadd.f32 %v2995_v30, %v2922_v46  ;;  %v5380_v30 = vld [vmem:[%s6573_s12 + $0x8] sm:$0xff]  }
 0x32d   : > { %v5120_v31 = vpop.f32.mrf.mxu0  ;;  %v3073_v32 = vpop.f32.mrf.mxu1 }
 0x32e   : > { %v3079_v51 = vadd.f32 %v3073_v32, %v3001_v47  ;;  %v5381_v31 = vld [vmem:[%s6573_s12 + $0x88] sm:$0xff]   ;;  %v5382_v32 = vld [vmem:[%s6573_s12 + $0x40] sm:$0xff]  }
 0x32f   : > { %v2998_v33 = vpop.f32.mrf.mxu0  ;;  %v5132_v34 = vpop.f32.mrf.mxu1 }
 0x330   : > { %v5383_v33 = vld [vmem:[%s6573_s12 + $0xc0] sm:$0xff]  }
 0x331   : > { %v5121_v35 = vpop.f32.mrf.mxu0  ;;  %v3076_v56 = vpop.f32.mrf.mxu1  ;;  %v5384_v34 = vld [vmem:[%s6573_s12] sm:$0xff]  }
 0x332   : > { %v5385_v35 = vld [vmem:[%s6573_s12 + $0x80] sm:$0xff]   ;;  %v5455_v56 = vmov 1966171168  }
 0x333   : > { %v5133_v36 = vpop.f32.mrf.mxu1 }
 0x334   : > { %v3661_v36 = vunpack.c.l.s4 %v5455_v56 }
 0x33b   : > { %v3151_v37 = vpop.f32.mrf.mxu0 }
 0x33c   : > { %v3157_v54 = vadd.f32 %v3151_v37, %v3079_v51  ;;  %v3663_v37 = vlaneseq }
 0x33d   : > { %v5144_v38 = vpop.f32.mrf.mxu0  ;;  %v3229_v39 = vpop.f32.mrf.mxu1 }
 0x33e   : > { %v3235_v60 = vadd.f32 %v3229_v39, %v3157_v54  ;;  %v3662_v38 = vunpack.c.0.s8 %v3661_v36  ;;  %v3664_v39 = vshrl.u32 %v3663_v37, 7 }
 0x33f   : > { %v3154_v40 = vpop.f32.mrf.mxu0  ;;  %v5156_v41 = vpop.f32.mrf.mxu1 }
 0x340   : > { %v3665_v42 = vsub.s32 %v3662_v38, %v3664_v39 }
 0x341   : > { %v5145_v48 = vpop.f32.mrf.mxu0  ;;  %v3232_v43 = vpop.f32.mrf.mxu1 }
 0x343   : > { %v5157_v44 = vpop.f32.mrf.mxu1 }
 0x34b   : > { %v3307_v49 = vpop.f32.mrf.mxu0 }
 0x34c   : > { %v3313_v61 = vadd.f32 %v3307_v49, %v3235_v60  ;;  %v3688_v60 = vsub.s32 0, %v3664_v39 }
 0x34d   : > { %v5168_v1 = vpop.f32.mrf.mxu0  ;;  %v3385_v50 = vpop.f32.mrf.mxu1 }
 0x34e   : > { %v3391_v62 = vadd.f32 %v3385_v50, %v3313_v61  ;;  %v3696_v61 = vsub.s32 2, %v3664_v39 }
 0x34f   : > { %v3310_v52 = vpop.f32.mrf.mxu0  ;;  %v5180_v53 = vpop.f32.mrf.mxu1 }
 0x350   : > { %v3472_v53 = vld [vmem:[%s6572_s11] sm:$0xf] }
 0x351   : > { %v5169_v55 = vpop.f32.mrf.mxu0  ;;  %v3388_v57 = vpop.f32.mrf.mxu1 }
 0x352   : > { %v3692_v55 = vsub.s32 1, %v3664_v39 }
 0x353   : > { %v5181_v58 = vpop.f32.mrf.mxu1 }
 0x354   : > { %v3700_v58 = vsub.s32 3, %v3664_v39 }
 0x35b   : > { %v3463_v63 = vpop.f32.mrf.mxu0 }
 0x35c   : > { %v3469_v8 = vadd.f32 %v3463_v63, %v3391_v62 }
 0x35d   : > { %v5192_v9 = vpop.f32.mrf.mxu0 }
 0x35e   : > { %v3470_v0 = vmax.f32 %v3469_v8, 0.0 }
 0x35f   : > { %v3466_v3 = vpop.f32.mrf.mxu0 }
 0x360   : > { %v3471_v2 = vpack.c.bf16 %v3470_v0, %v3470_v0 }
 0x361   : > { %v5193_v11 = vpop.f32.mrf.mxu0 }
 0x362   : > { %4492 = vmatmul.mubr.msk.bf16.vlgmr.msra.gmra.mxu1 %vm580_vm0, %v3471_v2  ;;  %4493 = vmatmul.mubr.msk.bf16.vlgmr.msra.gmra.mxu0 %vm580_vm0, %v3471_v2  ;;  %v3774_v11 = vld [vmem:[%s6574_s13] sm:$0x1] }
 0x363   : > { %4723 = vmatpush3.bf16.msra.mxu1 %v5356_v4  ;;  %4745 = vmatpush3.bf16.msra.mxu0 %v5357_v6 }
 0x364   : > { %4724 = vmatprep.subr.bf16.mxu1 %v5358_v7  ;;  %4746 = vmatprep.subr.bf16.mxu0 %v5359_v10 }
 0x367   : > { %4725 = vmatpush3.bf16.msra.mxu1 %v5360_v59  ;;  %4747 = vmatpush3.bf16.msra.mxu0 %v5361_v12 }
 0x368   : > { %4726 = vmatprep.subr.bf16.mxu1 %v5362_v13  ;;  %4748 = vmatprep.subr.bf16.mxu0 %v5363_v14 }
 0x36b   : > { %4727 = vmatpush3.bf16.msra.mxu1 %v5364_v15  ;;  %4749 = vmatpush3.bf16.msra.mxu0 %v5365_v16 }
 0x36c   : > { %4728 = vmatprep.subr.bf16.mxu1 %v5366_v17  ;;  %4750 = vmatprep.subr.bf16.mxu0 %v5367_v18 }
 0x36f   : > { %4729 = vmatpush3.bf16.msra.mxu1 %v5368_v5  ;;  %4751 = vmatpush3.bf16.msra.mxu0 %v5369_v20 }
 0x370   : > { %4730 = vmatprep.subr.bf16.mxu1 %v5370_v21  ;;  %4752 = vmatprep.subr.bf16.mxu0 %v5371_v22 }
 0x373   : > { %4731 = vmatpush3.bf16.msra.mxu1 %v5372_v23  ;;  %4753 = vmatpush3.bf16.msra.mxu0 %v5373_v24 }
 0x374   : > { %4732 = vmatprep.subr.bf16.mxu1 %v5374_v26  ;;  %4754 = vmatprep.subr.bf16.mxu0 %v5375_v25 }
 0x377   : > { %4733 = vmatpush3.bf16.msra.mxu1 %v5376_v27  ;;  %4755 = vmatpush3.bf16.msra.mxu0 %v5377_v19 }
 0x378   : > { %4734 = vmatprep.subr.bf16.mxu1 %v5378_v28  ;;  %4756 = vmatprep.subr.bf16.mxu0 %v5379_v29 }
 0x37b   : > { %4735 = vmatpush3.bf16.msra.mxu1 %v5380_v30  ;;  %4757 = vmatpush3.bf16.msra.mxu0 %v5381_v31 }
 0x37c   : > { %4736 = vmatprep.subr.bf16.mxu1 %v5382_v32  ;;  %4758 = vmatprep.subr.bf16.mxu0 %v5383_v33 }
 0x37f   : > { %4737 = vmatpush3.bf16.msra.mxu1 %v5384_v34  ;;  %4759 = vmatpush3.bf16.msra.mxu0 %v5385_v35 }
 0x422   : > { %v3606_v40 = vpop.f32.mrf.mxu1  ;;  %v3647_v41 = vpop.f32.mrf.mxu0 }
 0x424   : > { %v3608_v48 = vpop.f32.mrf.mxu1  ;;  %v3649_v43 = vpop.f32.mrf.mxu0 }
 0x425   : > { %v3658_v44 = vcombine.low %v3606_v40, %v3608_v48  ;;  %v3659_v45 = vcombine.low %v3647_v41, %v3649_v43 }
 0x426   : > { %v3610_v46 = vpop.f32.mrf.mxu1  ;;  %v3651_v47 = vpop.f32.mrf.mxu0 }
 0x427   : > { %v3666_v49 = vrot.slane %v3658_v44, %v3665_v42  ;;  %v3673_v1 = vrot.slane %v3659_v45, %v3665_v42 }
 0x428   : > { %v3611_v50 = vpop.f32.mrf.mxu1  ;;  %v3652_v51 = vpop.f32.mrf.mxu0 }
 0x429   : > { %v3674_v52 = vcombine.low %v3666_v49, %v3673_v1 }
 0x42b   : > { %v3681_v54 = vrot.slane %v3674_v52, %v3665_v42 }
 0x42d   : > { %v3683_v57 = vadd.f32 %v3681_v54, %v3472_v53 }
 0x42f   : > { %v3684_v62 = vmax.f32 %v3683_v57, 0.0 }
 0x431   : > { %v3693_v63 = vrot.slane %v3684_v62, %v3692_v55  ;;  %v3701_v8 = vrot.slane %v3684_v62, %v3700_v58  ;;  %v3689_v9 = vrot.slane %v3684_v62, %v3688_v60  ;;  %v3697_v0 = vrot.slane %v3684_v62, %v3696_v61 }
 0x433   : > { %v3707_v3 = vpack.c.bf16 %v3693_v63, %v3693_v63  ;;  %v3709_v4 = vpack.c.bf16 %v3701_v8, %v3701_v8  ;;  %v3706_v6 = vpack.c.bf16 %v3689_v9, %v3689_v9  ;;  %v3708_v2 = vpack.c.bf16 %v3697_v0, %v3697_v0 }
 0x435   : > { %3999 = vmatprep.mubr.bf16.mxu1 %v3707_v3  ;;  %4039 = vmatprep.mubr.bf16.mxu0 %v3709_v4 }
 0x436   : > { %4000 = vmatmul.mubr.bf16.vlgmr.msra.gmra.mxu1 %v3706_v6  ;;  %4040 = vmatmul.mubr.bf16.vlgmr.msra.gmra.mxu0 %v3708_v2 }
 0x4f6   : > { %v4738_v7 = vpop.f32.mrf.mxu1  ;;  %v4760_v10 = vpop.f32.mrf.mxu0 }
 0x4f8   : > { %v4739_v59 = vpop.f32.mrf.mxu1  ;;  %v4761_v12 = vpop.f32.mrf.mxu0 }
 0x4f9   : > { %v4740_v13 = vadd.f32 %v4739_v59, %v4738_v7  ;;  %v4762_v17 = vadd.f32 %v4761_v12, %v4760_v10 }
 0x4fa   : > { %v4741_v14 = vpop.f32.mrf.mxu1  ;;  %v4763_v15 = vpop.f32.mrf.mxu0 }
 0x4fb   : > { %v4002_v16 = vadd.f32 %v4740_v13, %v3774_v11 }
 0x4fc   : > { %v4742_v18 = vpop.f32.mrf.mxu1  ;;  %v4764_v5 = vpop.f32.mrf.mxu0 }
 0x4fd   : > { %v4042_v20 = vadd.f32 %v4762_v17, %v4002_v16 }
 0x4ff   : > { %v4048_v21 = vsel %vm4047_vm6, %v4042_v20, -inf }
 0x500   : > { %4049 = vmax.xlane.f32.xlu0 %v4048_v21 }
 0x589   : > { %v4050_v22 = vpop.xlane.xlu0 %4049 }
 0x58a   : > { %v4051_v23 = vsub.f32 %v4042_v20, %v4050_v22 }
 0x58c   : > { %v4052_v24 = vmul.f32 1.442695, %v4051_v23 }
 0x58e   : > { %5386 = vpow2.f32 %v4052_v24 }
 0x59b   : > { %v5387_v26 = vpop.eup %5386 }
 0x59c   : > { %v4054_v25 = vsel %vm4047_vm6, %v5387_v26, 0.0 }
 0x59d   : > { %4055 = vadd.xlane.f32.xlu0 %v4054_v25 }
 0x626   : > { %v4056_v27 = vpop.xlane.xlu0 %4055 }
 0x627   : > { %5388 = vrcp.f32 %v4056_v27 }
 0x634   : > { %v5389_v19 = vpop.eup %5388 }
 0x635   : > { %v4058_v28 = vmul.f32 %v5389_v19, %v5387_v26 }
 0x637   : > { %4059 = vst [vmem:[%s504_s21] sm:$0x1] %v4058_v28 }
 0x638   : > { %5403 = shalt.err (!%p5400_p3)
}
 0x639   : > { %s5404_s15 = scalar_lea.hbm %s4071_s18, 16  ;;  %s5408_s21 = scalar_lea.hbm %s6575_s14, 32 }
 0x63a   : > { %p5405_p4 = scmp.ne.s32.totalorder %s4071_s18, %s5404_s15  ;;  %p5409_p9 = scmp.lt.s32.totalorder %s4071_s18, %s6575_s14 }
 0x63b   : > { %p5410_p10 = scmp.lt.s32.totalorder %s5408_s21, %s5404_s15 }
 0x63c   : > { %p5406_p7 = pnand %p5405_p4, %p5570_p5 }
 0x63d   : > { %p5411_p11 = por %p5410_p10, %p5409_p9 }
 0x63e   : > { %p5407_p8 = pneg %p5406_p7 }
 0x640   : > { %p5412_p12 = pnand %p5411_p11, %p5407_p8 }
 0x642   : > { %5415 = shalt.err (!%p5412_p12)
}
 0x643   : > { %5194 = dma.vmem_to_hbm [thread:$0]  (%p5570_p5), %s4074_s28, 16, %s4071_s18, %s4061_s19  }
 0x644 PF: > { %p5200_p13 = scmp.ge.s32.totalorder %s5450_s16, 2  ;;  %s4085_s26 = sand.u32 1, %s5438_s29  }
 0x645   : > { %s4086_s0 = scalar_lea.sflag [#allocation3], %s4085_s26 }
 0x646   : > { %p5197_p0 = pnand %p5200_p13, %p5574_p6 }
 0x648   : > { %p5198_p1 = pneg %p5197_p0 }
 0x64a   : > { %5433 = dma.done.wait (%p5198_p1), %s4086_s0, 16  }
 0x64b   : > { %5435 = vsyncadd (%p5198_p1), %s4086_s0, 4294967280  ;;  %s6589_s16 = sld [smem:[#allocation6_spill]]  ;;  %s6592_s29 = smov %s5442_s30 }
 0x64c   : > { %s6590_s17 = sld [smem:[#allocation5_spill]] }
 0x64d   : > { %s6591_s15 = sld [smem:[#allocation7_spill]] }
 0x651   : > { %p24_p2 = scmp.ge.s32.totalorder %s6589_s16, 4  }
 0x652   : > { %s6593_s30 = smov %s6590_s17 }
 0x653   :  { %26 = sbr.rel (!%p24_p2) target bundleno = 5 (0x5), region = 146 }
 0x658   :  { %4090 = vsyncpa [#allocation3], 1 }
 0x659   :  { %4092 = vsyncpa [#allocation3 + $0x1], 1 }

</bundles_post_ra>
